<compile_context>
chip_gen: v7x
topology: tpu7x:2x2x1
jax: 0.10.0
libtpu: 0.0.40
codegen_flags: <defaults>
</compile_context>

<pallas_src>
import functools
import math

import jax
import jax.numpy as jnp
from jax.experimental import pallas as pl
from jax.experimental.pallas import tpu as pltpu  # noqa: F401  (no scratch/DMA needed at this size)

# ---------------- synthetic RoBERTa config (small) ----------------
VOCAB = 100
MAX_POS = 40
HIDDEN = 32
N_HEADS = 2
HEAD_DIM = HIDDEN // N_HEADS
N_LAYERS = 2
INTERMEDIATE = 64
NUM_LABELS = 3
PAD_ID = 1          # RoBERTa padding_idx
LN_EPS = 1e-5
# hidden_act for this synthetic config: tanh-approximate GELU ("gelu_new")

# ---- packed embedding/classifier slab layout (rows, width = HIDDEN) ----
VOCAB_PAD = ((VOCAB + 7) // 8) * 8           # 104 (sublane-aligned)
_ROW_POS = VOCAB_PAD                         # 104 .. 143 : position embeddings
_ROW_MISC = VOCAB_PAD + MAX_POS              # 144 : tok_emb, 145: emb_ln_g, 146: emb_ln_b, 147: cls_b
_ROW_CLSW = _ROW_MISC + 8                    # 152 .. 183 : classifier weight (cols 0..NUM_LABELS-1)
SLAB_ROWS = _ROW_CLSW + HIDDEN               # 184


def _full_spec(shape):
    nd = len(shape)
    return pl.BlockSpec(shape, lambda *_: (0,) * nd)


# ---------------- fully fused forward kernel ----------------
def _fused_forward_kernel(ids_ref, keymask_ref, slab_ref,
                          wqkv_ref, wo_ref, wi_ref, wo2_ref, vecs_ref,
                          o_ref, *, seq_len):
    f32 = jnp.float32
    BS = ids_ref.shape[0]
    S = seq_len
    B = BS // S
    scale = 1.0 / math.sqrt(HEAD_DIM)

    def mm(a, b):
        return jnp.dot(a, b, preferred_element_type=f32)

    def ln(x, g, b):
        mean = jnp.mean(x, axis=-1, keepdims=True)
        var = jnp.mean(jnp.square(x - mean), axis=-1, keepdims=True)
        return (x - mean) * jax.lax.rsqrt(var + LN_EPS) * g + b

    # ---- block-diagonal (same-sequence) structure, built once from iotas ----
    row = jax.lax.broadcasted_iota(jnp.int32, (BS, BS), 0)
    col = jax.lax.broadcasted_iota(jnp.int32, (BS, BS), 1)
    same_seq = jnp.zeros((BS, BS), jnp.bool_)
    for b in range(B):                                   # B is tiny & static
        in_r = (row >= b * S) & (row < (b + 1) * S)
        in_c = (col >= b * S) & (col < (b + 1) * S)
        same_seq = same_seq | (in_r & in_c)

    # ---- embeddings, gathered in-kernel via one-hot matmuls ----
    ids = ids_ref[...]                                   # [BS, 1] int32
    viota = jax.lax.broadcasted_iota(jnp.int32, (BS, VOCAB_PAD), 1)
    wemb = mm((ids == viota).astype(f32), slab_ref[0:VOCAB_PAD, :])      # [BS, H]

    # RoBERTa position ids: padding_idx + cumsum(not_pad)*not_pad (per sequence)
    npad = (ids != PAD_ID).astype(f32)                   # [BS, 1]
    tri = jnp.where(same_seq & (col <= row), 1.0, 0.0)   # inclusive block-lower-tri
    # rhs widened to 8 lanes to keep the MXU shape friendly; all columns equal.
    cum = mm(tri, npad * jnp.ones((1, 8), f32))[:, 0:1]  # [BS, 1]
    pos_ids = (cum * npad).astype(jnp.int32) + PAD_ID
    piota = jax.lax.broadcasted_iota(jnp.int32, (BS, MAX_POS), 1)
    pemb = mm((pos_ids == piota).astype(f32),
              slab_ref[_ROW_POS:_ROW_POS + MAX_POS, :])                  # [BS, H]

    tok = slab_ref[_ROW_MISC:_ROW_MISC + 1, :]           # token-type-0 embedding
    emb_g = slab_ref[_ROW_MISC + 1:_ROW_MISC + 2, :]
    emb_b = slab_ref[_ROW_MISC + 2:_ROW_MISC + 3, :]
    # embedding LayerNorm (dropout layers are identity in eval mode)
    h = ln(wemb + pemb + tok, emb_g, emb_b)              # [BS, H]

    # additive attention mask: key padding + cross-sequence blocking, hoisted
    keymask = keymask_ref[...]                           # [1, BS] (1 = attend)
    addmask = jnp.where(same_seq & (keymask > 0.5), 0.0, -1e9)           # [BS, BS]

    for l in range(N_LAYERS):
        vl = vecs_ref[l]                                 # [8, 3H] bias / LN vectors
        # fused QKV projection: one [BS, H] x [H, 3H] matmul
        qkv = mm(h, wqkv_ref[l]) + vl[0:1, :]            # [BS, 3H]

        ctx_heads = []
        for hd in range(N_HEADS):                        # 2 heads, static loop
            c0 = hd * HEAD_DIM
            q = qkv[:, c0:c0 + HEAD_DIM]
            k = qkv[:, HIDDEN + c0:HIDDEN + c0 + HEAD_DIM]
            v = qkv[:, 2 * HIDDEN + c0:2 * HIDDEN + c0 + HEAD_DIM]
            s = jax.lax.dot_general(q, k, (((1,), (1,)), ((), ())),
                                    preferred_element_type=f32) * scale  # [BS, BS]
            s = s + addmask
            s = s - jnp.max(s, axis=-1, keepdims=True)
            p = jnp.exp(s)
            p = p * pl.reciprocal(jnp.sum(p, axis=-1, keepdims=True), approx=True)
            ctx_heads.append(mm(p, v))                   # [BS, Dh]
        ctx = jnp.concatenate(ctx_heads, axis=-1)        # [BS, H]

        attn_out = mm(ctx, wo_ref[l]) + vl[1:2, 0:HIDDEN]
        h = ln(attn_out + h, vl[4:5, 0:HIDDEN], vl[5:6, 0:HIDDEN])

        inter = mm(h, wi_ref[l]) + vl[2:3, 0:INTERMEDIATE]
        c = 0.7978845608028654  # sqrt(2/pi)  (tanh-approximate GELU)
        inter = 0.5 * inter * (1.0 + jnp.tanh(c * (inter + 0.044715 * inter * inter * inter)))
        ffn_out = mm(inter, wo2_ref[l]) + vl[3:4, 0:HIDDEN]
        h = ln(ffn_out + h, vl[6:7, 0:HIDDEN], vl[7:8, 0:HIDDEN])

    # classifier + argmax (softmax dropped: argmax(softmax(x)) == argmax(x))
    cls_w = slab_ref[_ROW_CLSW:_ROW_CLSW + HIDDEN, 0:NUM_LABELS]
    cls_b = slab_ref[_ROW_MISC + 3:_ROW_MISC + 4, 0:NUM_LABELS]
    logits = mm(h, cls_w) + cls_b                        # [BS, NUM_LABELS]
    mx = jnp.max(logits, axis=-1, keepdims=True)
    lab = jax.lax.broadcasted_iota(jnp.int32, logits.shape, 1)
    cand = jnp.where(logits == mx, lab, jnp.int32(2 ** 30))   # first-index tiebreak
    o_ref[...] = jnp.min(cand, axis=-1, keepdims=True)


# ---------------- parameter packing (done ONCE, outside jit) ----------------
def pack_params(params):
    f32 = jnp.float32

    # embedding / classifier slab  [SLAB_ROWS, HIDDEN]
    word = jnp.pad(params['word_emb'].astype(f32), ((0, VOCAB_PAD - VOCAB), (0, 0)))
    misc = jnp.zeros((8, HIDDEN), f32)
    misc = misc.at[0].set(params['tok_emb'][0])
    misc = misc.at[1].set(params['emb_ln_g'])
    misc = misc.at[2].set(params['emb_ln_b'])
    misc = misc.at[3, :NUM_LABELS].set(params['cls_b'])
    clsw = jnp.pad(params['cls_w'].astype(f32), ((0, 0), (0, HIDDEN - NUM_LABELS)))
    slab = jnp.concatenate([word, params['pos_emb'].astype(f32), misc, clsw], axis=0)
    assert slab.shape == (SLAB_ROWS, HIDDEN)

    layers = params['layers']

    def stack(fn):
        return jnp.stack([fn(L) for L in layers])

    def vecrow(v):
        return jnp.pad(v, (0, 3 * HIDDEN - v.shape[0]))

    wqkv = stack(lambda L: jnp.concatenate([L['wq'], L['wk'], L['wv']], axis=1))  # [L,H,3H]
    wo = stack(lambda L: L['wo'])                                                 # [L,H,H]
    wi = stack(lambda L: L['wi'])                                                 # [L,H,I]
    wo2 = stack(lambda L: L['wo2'])                                               # [L,I,H]
    vecs = stack(lambda L: jnp.stack([
        jnp.concatenate([L['bq'], L['bk'], L['bv']]),    # row 0: bqkv        (3H)
        vecrow(L['bo']),                                 # row 1: bo          (H)
        vecrow(L['bi']),                                 # row 2: bi          (I)
        vecrow(L['bo2']),                                # row 3: bo2         (H)
        vecrow(L['attn_ln_g']),                          # row 4
        vecrow(L['attn_ln_b']),                          # row 5
        vecrow(L['out_ln_g']),                           # row 6
        vecrow(L['out_ln_b']),                           # row 7
    ]))                                                                            # [L,8,3H]
    return (slab, wqkv, wo, wi, wo2, vecs)


# ---------------- deterministic parameter init ----------------
def init_params(key):
    def dense(k, fan_in, fan_out):
        w = jax.random.normal(k, (fan_in, fan_out), jnp.float32) * 0.02
        b = jnp.zeros((fan_out,), jnp.float32)
        return w, b

    keys = jax.random.split(key, 4 + N_LAYERS)
    params = {
        'word_emb': jax.random.normal(keys[0], (VOCAB, HIDDEN), jnp.float32) * 0.02,
        'pos_emb':  jax.random.normal(keys[1], (MAX_POS, HIDDEN), jnp.float32) * 0.02,
        'tok_emb':  jax.random.normal(keys[2], (1, HIDDEN), jnp.float32) * 0.02,
        'emb_ln_g': jnp.ones((HIDDEN,), jnp.float32),
        'emb_ln_b': jnp.zeros((HIDDEN,), jnp.float32),
    }
    layers = []
    for i in range(N_LAYERS):
        lk = jax.random.split(keys[4 + i], 6)
        layer = {}
        layer['wq'], layer['bq'] = dense(lk[0], HIDDEN, HIDDEN)
        layer['wk'], layer['bk'] = dense(lk[1], HIDDEN, HIDDEN)
        layer['wv'], layer['bv'] = dense(lk[2], HIDDEN, HIDDEN)
        layer['wo'], layer['bo'] = dense(lk[3], HIDDEN, HIDDEN)
        layer['attn_ln_g'] = jnp.ones((HIDDEN,), jnp.float32)
        layer['attn_ln_b'] = jnp.zeros((HIDDEN,), jnp.float32)
        layer['wi'], layer['bi'] = dense(lk[4], HIDDEN, INTERMEDIATE)
        layer['wo2'], layer['bo2'] = dense(lk[5], INTERMEDIATE, HIDDEN)
        layer['out_ln_g'] = jnp.ones((HIDDEN,), jnp.float32)
        layer['out_ln_b'] = jnp.zeros((HIDDEN,), jnp.float32)
        layers.append(layer)
    params['layers'] = layers
    params['cls_w'], params['cls_b'] = dense(keys[3], HIDDEN, NUM_LABELS)
    return params


# ---------------- KeywordModel.forward ----------------
def keyword_model_forward(packed, input_ids, attention_mask):
    B, S = input_ids.shape
    BS = B * S
    ids = input_ids.reshape(BS, 1).astype(jnp.int32)
    keymask = attention_mask.astype(jnp.float32).reshape(1, BS)
    slab, wqkv, wo, wi, wo2, vecs = packed

    args = (ids, keymask, slab, wqkv, wo, wi, wo2, vecs)
    out = pl.pallas_call(
        functools.partial(_fused_forward_kernel, seq_len=S),
        out_shape=jax.ShapeDtypeStruct((BS, 1), jnp.int32),
        in_specs=[_full_spec(a.shape) for a in args],
        out_specs=_full_spec((BS, 1)),
    )(*args)

    # TODO(synk): torch returns int64 indices; TPU kernel emits int32.
    return out.reshape(B, S)


if __name__ == "__main__":
    key = jax.random.PRNGKey(0)
    pkey, dkey = jax.random.split(key)
    params = init_params(pkey)
    packed = pack_params(params)                         # packed once, outside jit

    B, S = 2, 8
    input_ids = jax.random.randint(dkey, (B, S), 2, VOCAB, dtype=jnp.int32)
    input_ids = input_ids.at[1, 6:].set(PAD_ID)          # pad the tail of seq 1
    attention_mask = jnp.ones((B, S), jnp.float32).at[1, 6:].set(0.0)

    fwd = jax.jit(functools.partial(keyword_model_forward, packed))
    out = fwd(input_ids, attention_mask)
    jax.block_until_ready(out)
    assert out.shape == (B, S) and out.dtype == jnp.int32
    print("KERNEL_OK")
</pallas_src>

<mosaic_0001>
module attributes {stable_mosaic.version = 11 : i64} {
  func.func @_fused_forward_kernel(%arg0: memref<16x1xi32, #tpu.memory_space<vmem>>, %arg1: memref<1x16xf32, #tpu.memory_space<vmem>>, %arg2: memref<184x32xf32, #tpu.memory_space<vmem>>, %arg3: memref<2x32x96xf32, #tpu.memory_space<vmem>>, %arg4: memref<2x32x32xf32, #tpu.memory_space<vmem>>, %arg5: memref<2x32x64xf32, #tpu.memory_space<vmem>>, %arg6: memref<2x64x32xf32, #tpu.memory_space<vmem>>, %arg7: memref<2x8x96xf32, #tpu.memory_space<vmem>>, %arg8: memref<16x1xi32, #tpu.memory_space<vmem>>) attributes {dimension_semantics = [], scalar_prefetch = 0 : i64, scratch_operands = 0 : i64, tpu.core_type = #tpu.core_type<tc>} {
    %0 = tpu.iota {dimensions = array<i32: 0>} : vector<16x16xi32>
    %1 = tpu.iota {dimensions = array<i32: 1>} : vector<16x16xi32>
    %false = arith.constant false
    %2 = vector.broadcast %false : i1 to vector<16x16xi1>
    %c0_i32 = arith.constant 0 : i32
    %3 = vector.broadcast %c0_i32 : i32 to vector<16x16xi32>
    %4 = arith.cmpi sge, %0, %3 : vector<16x16xi32>
    %c8_i32 = arith.constant 8 : i32
    %5 = vector.broadcast %c8_i32 : i32 to vector<16x16xi32>
    %6 = arith.cmpi slt, %0, %5 : vector<16x16xi32>
    %7 = arith.andi %4, %6 : vector<16x16xi1>
    %c0_i32_0 = arith.constant 0 : i32
    %8 = vector.broadcast %c0_i32_0 : i32 to vector<16x16xi32>
    %9 = arith.cmpi sge, %1, %8 : vector<16x16xi32>
    %c8_i32_1 = arith.constant 8 : i32
    %10 = vector.broadcast %c8_i32_1 : i32 to vector<16x16xi32>
    %11 = arith.cmpi slt, %1, %10 : vector<16x16xi32>
    %12 = arith.andi %9, %11 : vector<16x16xi1>
    %13 = arith.andi %7, %12 : vector<16x16xi1>
    %14 = arith.ori %2, %13 : vector<16x16xi1>
    %c8_i32_2 = arith.constant 8 : i32
    %15 = vector.broadcast %c8_i32_2 : i32 to vector<16x16xi32>
    %16 = arith.cmpi sge, %0, %15 : vector<16x16xi32>
    %c16_i32 = arith.constant 16 : i32
    %17 = vector.broadcast %c16_i32 : i32 to vector<16x16xi32>
    %18 = arith.cmpi slt, %0, %17 : vector<16x16xi32>
    %19 = arith.andi %16, %18 : vector<16x16xi1>
    %c8_i32_3 = arith.constant 8 : i32
    %20 = vector.broadcast %c8_i32_3 : i32 to vector<16x16xi32>
    %21 = arith.cmpi sge, %1, %20 : vector<16x16xi32>
    %c16_i32_4 = arith.constant 16 : i32
    %22 = vector.broadcast %c16_i32_4 : i32 to vector<16x16xi32>
    %23 = arith.cmpi slt, %1, %22 : vector<16x16xi32>
    %24 = arith.andi %21, %23 : vector<16x16xi1>
    %25 = arith.andi %19, %24 : vector<16x16xi1>
    %26 = arith.ori %14, %25 : vector<16x16xi1>
    %c0 = arith.constant 0 : index
    %c0_5 = arith.constant 0 : index
    %27 = vector.load %arg0[%c0, %c0_5] : memref<16x1xi32, #tpu.memory_space<vmem>>, vector<16x1xi32>
    %28 = tpu.iota {dimensions = array<i32: 1>} : vector<16x104xi32>
    %29 = vector.broadcast %27 : vector<16x1xi32> to vector<16x104xi32>
    %30 = arith.cmpi eq, %29, %28 : vector<16x104xi32>
    %31 = arith.extui %30 : vector<16x104xi1> to vector<16x104xi32>
    %32 = arith.sitofp %31 : vector<16x104xi32> to vector<16x104xf32>
    %c0_6 = arith.constant 0 : index
    %c0_7 = arith.constant 0 : index
    %33 = vector.load %arg2[%c0_6, %c0_7] : memref<184x32xf32, #tpu.memory_space<vmem>>, vector<104x32xf32>
    %cst = arith.constant dense<0.000000e+00> : vector<16x32xf32>
    %34 = tpu.matmul %32, %33, %cst {dimension_numbers = #tpu.dot_dimension_numbers<[1], [0], [0], [1], [0, 0, 1, 1], [], []>} : vector<16x104xf32>, vector<104x32xf32>, vector<16x32xf32> -> vector<16x32xf32>
    %c1_i32 = arith.constant 1 : i32
    %35 = vector.broadcast %c1_i32 : i32 to vector<16x1xi32>
    %36 = arith.cmpi ne, %27, %35 : vector<16x1xi32>
    %37 = arith.extui %36 : vector<16x1xi1> to vector<16x1xi32>
    %38 = arith.sitofp %37 : vector<16x1xi32> to vector<16x1xf32>
    %39 = arith.cmpi sle, %1, %0 : vector<16x16xi32>
    %40 = arith.andi %26, %39 : vector<16x16xi1>
    %cst_8 = arith.constant 1.000000e+00 : f32
    %cst_9 = arith.constant 0.000000e+00 : f32
    %41 = vector.broadcast %cst_8 : f32 to vector<16x16xf32>
    %42 = vector.broadcast %cst_9 : f32 to vector<16x16xf32>
    %43 = arith.select %40, %41, %42 : vector<16x16xi1>, vector<16x16xf32>
    %cst_10 = arith.constant 1.000000e+00 : f32
    %44 = vector.broadcast %cst_10 : f32 to vector<1x8xf32>
    %45 = vector.broadcast %38 : vector<16x1xf32> to vector<16x8xf32>
    %46 = vector.broadcast %44 : vector<1x8xf32> to vector<16x8xf32>
    %47 = arith.mulf %45, %46 : vector<16x8xf32>
    %cst_11 = arith.constant dense<0.000000e+00> : vector<16x8xf32>
    %48 = tpu.matmul %43, %47, %cst_11 {dimension_numbers = #tpu.dot_dimension_numbers<[1], [0], [0], [1], [0, 0, 1, 1], [], []>} : vector<16x16xf32>, vector<16x8xf32>, vector<16x8xf32> -> vector<16x8xf32>
    %49 = vector.extract_strided_slice %48 {offsets = [0, 0], sizes = [16, 1], strides = [1, 1]} : vector<16x8xf32> to vector<16x1xf32>
    %50 = arith.mulf %49, %38 : vector<16x1xf32>
    %51 = arith.fptosi %50 : vector<16x1xf32> to vector<16x1xi32>
    %c1_i32_12 = arith.constant 1 : i32
    %52 = vector.broadcast %c1_i32_12 : i32 to vector<16x1xi32>
    %53 = arith.addi %51, %52 : vector<16x1xi32>
    %54 = tpu.iota {dimensions = array<i32: 1>} : vector<16x40xi32>
    %55 = vector.broadcast %53 : vector<16x1xi32> to vector<16x40xi32>
    %56 = arith.cmpi eq, %55, %54 : vector<16x40xi32>
    %57 = arith.extui %56 : vector<16x40xi1> to vector<16x40xi32>
    %58 = arith.sitofp %57 : vector<16x40xi32> to vector<16x40xf32>
    %c104 = arith.constant 104 : index
    %c0_13 = arith.constant 0 : index
    %59 = vector.load %arg2[%c104, %c0_13] : memref<184x32xf32, #tpu.memory_space<vmem>>, vector<40x32xf32>
    %cst_14 = arith.constant dense<0.000000e+00> : vector<16x32xf32>
    %60 = tpu.matmul %58, %59, %cst_14 {dimension_numbers = #tpu.dot_dimension_numbers<[1], [0], [0], [1], [0, 0, 1, 1], [], []>} : vector<16x40xf32>, vector<40x32xf32>, vector<16x32xf32> -> vector<16x32xf32>
    %c144 = arith.constant 144 : index
    %c0_15 = arith.constant 0 : index
    %61 = vector.load %arg2[%c144, %c0_15] : memref<184x32xf32, #tpu.memory_space<vmem>>, vector<1x32xf32>
    %c145 = arith.constant 145 : index
    %c0_16 = arith.constant 0 : index
    %62 = vector.load %arg2[%c145, %c0_16] : memref<184x32xf32, #tpu.memory_space<vmem>>, vector<1x32xf32>
    %c146 = arith.constant 146 : index
    %c0_17 = arith.constant 0 : index
    %63 = vector.load %arg2[%c146, %c0_17] : memref<184x32xf32, #tpu.memory_space<vmem>>, vector<1x32xf32>
    %64 = arith.addf %34, %60 : vector<16x32xf32>
    %65 = vector.broadcast %61 : vector<1x32xf32> to vector<16x32xf32>
    %66 = arith.addf %64, %65 : vector<16x32xf32>
    %cst_18 = arith.constant dense<0.000000e+00> : vector<16xf32>
    %67 = vector.multi_reduction <add>, %66, %cst_18 [1] : vector<16x32xf32> to vector<16xf32>
    %68 = vector.shape_cast %67 : vector<16xf32> to vector<16x1xf32>
    %cst_19 = arith.constant 3.200000e+01 : f32
    %69 = vector.broadcast %cst_19 : f32 to vector<16x1xf32>
    %70 = arith.divf %68, %69 : vector<16x1xf32>
    %71 = vector.broadcast %70 : vector<16x1xf32> to vector<16x32xf32>
    %72 = arith.subf %66, %71 : vector<16x32xf32>
    %73 = arith.mulf %72, %72 : vector<16x32xf32>
    %cst_20 = arith.constant dense<0.000000e+00> : vector<16xf32>
    %74 = vector.multi_reduction <add>, %73, %cst_20 [1] : vector<16x32xf32> to vector<16xf32>
    %75 = vector.shape_cast %74 : vector<16xf32> to vector<16x1xf32>
    %cst_21 = arith.constant 3.200000e+01 : f32
    %76 = vector.broadcast %cst_21 : f32 to vector<16x1xf32>
    %77 = arith.divf %75, %76 : vector<16x1xf32>
    %78 = vector.broadcast %70 : vector<16x1xf32> to vector<16x32xf32>
    %79 = arith.subf %66, %78 : vector<16x32xf32>
    %cst_22 = arith.constant 9.99999974E-6 : f32
    %80 = vector.broadcast %cst_22 : f32 to vector<16x1xf32>
    %81 = arith.addf %77, %80 : vector<16x1xf32>
    %82 = math.rsqrt %81 : vector<16x1xf32>
    %83 = vector.broadcast %82 : vector<16x1xf32> to vector<16x32xf32>
    %84 = arith.mulf %79, %83 : vector<16x32xf32>
    %85 = vector.broadcast %62 : vector<1x32xf32> to vector<16x32xf32>
    %86 = arith.mulf %84, %85 : vector<16x32xf32>
    %87 = vector.broadcast %63 : vector<1x32xf32> to vector<16x32xf32>
    %88 = arith.addf %86, %87 : vector<16x32xf32>
    %c0_23 = arith.constant 0 : index
    %c0_24 = arith.constant 0 : index
    %89 = vector.load %arg1[%c0_23, %c0_24] : memref<1x16xf32, #tpu.memory_space<vmem>>, vector<1x16xf32>
    %cst_25 = arith.constant 5.000000e-01 : f32
    %90 = vector.broadcast %cst_25 : f32 to vector<1x16xf32>
    %91 = arith.cmpf ogt, %89, %90 : vector<1x16xf32>
    %92 = vector.broadcast %91 : vector<1x16xi1> to vector<16x16xi1>
    %93 = arith.andi %26, %92 : vector<16x16xi1>
    %cst_26 = arith.constant 0.000000e+00 : f32
    %cst_27 = arith.constant -1.000000e+09 : f32
    %94 = vector.broadcast %cst_26 : f32 to vector<16x16xf32>
    %95 = vector.broadcast %cst_27 : f32 to vector<16x16xf32>
    %96 = arith.select %93, %94, %95 : vector<16x16xi1>, vector<16x16xf32>
    %c0_28 = arith.constant 0 : index
    %c0_29 = arith.constant 0 : index
    %c0_30 = arith.constant 0 : index
    %97 = vector.load %arg7[%c0_28, %c0_29, %c0_30] : memref<2x8x96xf32, #tpu.memory_space<vmem>>, vector<1x8x96xf32>
    %98 = vector.shape_cast %97 : vector<1x8x96xf32> to vector<8x96xf32>
    %c0_31 = arith.constant 0 : index
    %c0_32 = arith.constant 0 : index
    %c0_33 = arith.constant 0 : index
    %99 = vector.load %arg3[%c0_31, %c0_32, %c0_33] : memref<2x32x96xf32, #tpu.memory_space<vmem>>, vector<1x32x96xf32>
    %100 = vector.shape_cast %99 : vector<1x32x96xf32> to vector<32x96xf32>
    %cst_34 = arith.constant dense<0.000000e+00> : vector<16x96xf32>
    %101 = tpu.matmul %88, %100, %cst_34 {dimension_numbers = #tpu.dot_dimension_numbers<[1], [0], [0], [1], [0, 0, 1, 1], [], []>} : vector<16x32xf32>, vector<32x96xf32>, vector<16x96xf32> -> vector<16x96xf32>
    %102 = vector.extract_strided_slice %98 {offsets = [0, 0], sizes = [1, 96], strides = [1, 1]} : vector<8x96xf32> to vector<1x96xf32>
    %103 = vector.broadcast %102 : vector<1x96xf32> to vector<16x96xf32>
    %104 = arith.addf %101, %103 : vector<16x96xf32>
    %105 = vector.extract_strided_slice %104 {offsets = [0, 0], sizes = [16, 16], strides = [1, 1]} : vector<16x96xf32> to vector<16x16xf32>
    %106 = vector.extract_strided_slice %104 {offsets = [0, 32], sizes = [16, 16], strides = [1, 1]} : vector<16x96xf32> to vector<16x16xf32>
    %107 = vector.extract_strided_slice %104 {offsets = [0, 64], sizes = [16, 16], strides = [1, 1]} : vector<16x96xf32> to vector<16x16xf32>
    %cst_35 = arith.constant dense<0.000000e+00> : vector<16x16xf32>
    %108 = tpu.matmul %105, %106, %cst_35 {dimension_numbers = #tpu.dot_dimension_numbers<[1], [1], [0], [0], [0, 0, 1, 0], [], []>} : vector<16x16xf32>, vector<16x16xf32>, vector<16x16xf32> -> vector<16x16xf32>
    %cst_36 = arith.constant 2.500000e-01 : f32
    %109 = vector.broadcast %cst_36 : f32 to vector<16x16xf32>
    %110 = arith.mulf %108, %109 : vector<16x16xf32>
    %111 = arith.addf %110, %96 : vector<16x16xf32>
    %cst_37 = arith.constant dense<0xFF800000> : vector<16xf32>
    %112 = vector.multi_reduction <maximumf>, %111, %cst_37 [1] : vector<16x16xf32> to vector<16xf32>
    %113 = vector.shape_cast %112 : vector<16xf32> to vector<16x1xf32>
    %114 = vector.broadcast %113 : vector<16x1xf32> to vector<16x16xf32>
    %115 = arith.subf %111, %114 : vector<16x16xf32>
    %116 = math.exp %115 : vector<16x16xf32>
    %cst_38 = arith.constant dense<0.000000e+00> : vector<16xf32>
    %117 = vector.multi_reduction <add>, %116, %cst_38 [1] : vector<16x16xf32> to vector<16xf32>
    %118 = vector.shape_cast %117 : vector<16xf32> to vector<16x1xf32>
    %119 = tpu.reciprocal %118 {approx = true} : vector<16x1xf32> -> vector<16x1xf32>
    %120 = vector.broadcast %119 : vector<16x1xf32> to vector<16x16xf32>
    %121 = arith.mulf %116, %120 : vector<16x16xf32>
    %cst_39 = arith.constant dense<0.000000e+00> : vector<16x16xf32>
    %122 = tpu.matmul %121, %107, %cst_39 {dimension_numbers = #tpu.dot_dimension_numbers<[1], [0], [0], [1], [0, 0, 1, 1], [], []>} : vector<16x16xf32>, vector<16x16xf32>, vector<16x16xf32> -> vector<16x16xf32>
    %123 = vector.extract_strided_slice %104 {offsets = [0, 16], sizes = [16, 16], strides = [1, 1]} : vector<16x96xf32> to vector<16x16xf32>
    %124 = vector.extract_strided_slice %104 {offsets = [0, 48], sizes = [16, 16], strides = [1, 1]} : vector<16x96xf32> to vector<16x16xf32>
    %125 = vector.extract_strided_slice %104 {offsets = [0, 80], sizes = [16, 16], strides = [1, 1]} : vector<16x96xf32> to vector<16x16xf32>
    %cst_40 = arith.constant dense<0.000000e+00> : vector<16x16xf32>
    %126 = tpu.matmul %123, %124, %cst_40 {dimension_numbers = #tpu.dot_dimension_numbers<[1], [1], [0], [0], [0, 0, 1, 0], [], []>} : vector<16x16xf32>, vector<16x16xf32>, vector<16x16xf32> -> vector<16x16xf32>
    %cst_41 = arith.constant 2.500000e-01 : f32
    %127 = vector.broadcast %cst_41 : f32 to vector<16x16xf32>
    %128 = arith.mulf %126, %127 : vector<16x16xf32>
    %129 = arith.addf %128, %96 : vector<16x16xf32>
    %cst_42 = arith.constant dense<0xFF800000> : vector<16xf32>
    %130 = vector.multi_reduction <maximumf>, %129, %cst_42 [1] : vector<16x16xf32> to vector<16xf32>
    %131 = vector.shape_cast %130 : vector<16xf32> to vector<16x1xf32>
    %132 = vector.broadcast %131 : vector<16x1xf32> to vector<16x16xf32>
    %133 = arith.subf %129, %132 : vector<16x16xf32>
    %134 = math.exp %133 : vector<16x16xf32>
    %cst_43 = arith.constant dense<0.000000e+00> : vector<16xf32>
    %135 = vector.multi_reduction <add>, %134, %cst_43 [1] : vector<16x16xf32> to vector<16xf32>
    %136 = vector.shape_cast %135 : vector<16xf32> to vector<16x1xf32>
    %137 = tpu.reciprocal %136 {approx = true} : vector<16x1xf32> -> vector<16x1xf32>
    %138 = vector.broadcast %137 : vector<16x1xf32> to vector<16x16xf32>
    %139 = arith.mulf %134, %138 : vector<16x16xf32>
    %cst_44 = arith.constant dense<0.000000e+00> : vector<16x16xf32>
    %140 = tpu.matmul %139, %125, %cst_44 {dimension_numbers = #tpu.dot_dimension_numbers<[1], [0], [0], [1], [0, 0, 1, 1], [], []>} : vector<16x16xf32>, vector<16x16xf32>, vector<16x16xf32> -> vector<16x16xf32>
    %141 = tpu.concatenate %122, %140 in 1 : vector<16x16xf32>, vector<16x16xf32> -> vector<16x32xf32>
    %c0_45 = arith.constant 0 : index
    %c0_46 = arith.constant 0 : index
    %c0_47 = arith.constant 0 : index
    %142 = vector.load %arg4[%c0_45, %c0_46, %c0_47] : memref<2x32x32xf32, #tpu.memory_space<vmem>>, vector<1x32x32xf32>
    %143 = vector.shape_cast %142 : vector<1x32x32xf32> to vector<32x32xf32>
    %cst_48 = arith.constant dense<0.000000e+00> : vector<16x32xf32>
    %144 = tpu.matmul %141, %143, %cst_48 {dimension_numbers = #tpu.dot_dimension_numbers<[1], [0], [0], [1], [0, 0, 1, 1], [], []>} : vector<16x32xf32>, vector<32x32xf32>, vector<16x32xf32> -> vector<16x32xf32>
    %145 = vector.extract_strided_slice %98 {offsets = [1, 0], sizes = [1, 32], strides = [1, 1]} : vector<8x96xf32> to vector<1x32xf32>
    %146 = vector.broadcast %145 : vector<1x32xf32> to vector<16x32xf32>
    %147 = arith.addf %144, %146 : vector<16x32xf32>
    %148 = arith.addf %147, %88 : vector<16x32xf32>
    %149 = vector.extract_strided_slice %98 {offsets = [4, 0], sizes = [1, 32], strides = [1, 1]} : vector<8x96xf32> to vector<1x32xf32>
    %150 = vector.extract_strided_slice %98 {offsets = [5, 0], sizes = [1, 32], strides = [1, 1]} : vector<8x96xf32> to vector<1x32xf32>
    %cst_49 = arith.constant dense<0.000000e+00> : vector<16xf32>
    %151 = vector.multi_reduction <add>, %148, %cst_49 [1] : vector<16x32xf32> to vector<16xf32>
    %152 = vector.shape_cast %151 : vector<16xf32> to vector<16x1xf32>
    %cst_50 = arith.constant 3.200000e+01 : f32
    %153 = vector.broadcast %cst_50 : f32 to vector<16x1xf32>
    %154 = arith.divf %152, %153 : vector<16x1xf32>
    %155 = vector.broadcast %154 : vector<16x1xf32> to vector<16x32xf32>
    %156 = arith.subf %148, %155 : vector<16x32xf32>
    %157 = arith.mulf %156, %156 : vector<16x32xf32>
    %cst_51 = arith.constant dense<0.000000e+00> : vector<16xf32>
    %158 = vector.multi_reduction <add>, %157, %cst_51 [1] : vector<16x32xf32> to vector<16xf32>
    %159 = vector.shape_cast %158 : vector<16xf32> to vector<16x1xf32>
    %cst_52 = arith.constant 3.200000e+01 : f32
    %160 = vector.broadcast %cst_52 : f32 to vector<16x1xf32>
    %161 = arith.divf %159, %160 : vector<16x1xf32>
    %162 = vector.broadcast %154 : vector<16x1xf32> to vector<16x32xf32>
    %163 = arith.subf %148, %162 : vector<16x32xf32>
    %cst_53 = arith.constant 9.99999974E-6 : f32
    %164 = vector.broadcast %cst_53 : f32 to vector<16x1xf32>
    %165 = arith.addf %161, %164 : vector<16x1xf32>
    %166 = math.rsqrt %165 : vector<16x1xf32>
    %167 = vector.broadcast %166 : vector<16x1xf32> to vector<16x32xf32>
    %168 = arith.mulf %163, %167 : vector<16x32xf32>
    %169 = vector.broadcast %149 : vector<1x32xf32> to vector<16x32xf32>
    %170 = arith.mulf %168, %169 : vector<16x32xf32>
    %171 = vector.broadcast %150 : vector<1x32xf32> to vector<16x32xf32>
    %172 = arith.addf %170, %171 : vector<16x32xf32>
    %c0_54 = arith.constant 0 : index
    %c0_55 = arith.constant 0 : index
    %c0_56 = arith.constant 0 : index
    %173 = vector.load %arg5[%c0_54, %c0_55, %c0_56] : memref<2x32x64xf32, #tpu.memory_space<vmem>>, vector<1x32x64xf32>
    %174 = vector.shape_cast %173 : vector<1x32x64xf32> to vector<32x64xf32>
    %cst_57 = arith.constant dense<0.000000e+00> : vector<16x64xf32>
    %175 = tpu.matmul %172, %174, %cst_57 {dimension_numbers = #tpu.dot_dimension_numbers<[1], [0], [0], [1], [0, 0, 1, 1], [], []>} : vector<16x32xf32>, vector<32x64xf32>, vector<16x64xf32> -> vector<16x64xf32>
    %176 = vector.extract_strided_slice %98 {offsets = [2, 0], sizes = [1, 64], strides = [1, 1]} : vector<8x96xf32> to vector<1x64xf32>
    %177 = vector.broadcast %176 : vector<1x64xf32> to vector<16x64xf32>
    %178 = arith.addf %175, %177 : vector<16x64xf32>
    %cst_58 = arith.constant 5.000000e-01 : f32
    %179 = vector.broadcast %cst_58 : f32 to vector<16x64xf32>
    %180 = arith.mulf %179, %178 : vector<16x64xf32>
    %cst_59 = arith.constant 4.471500e-02 : f32
    %181 = vector.broadcast %cst_59 : f32 to vector<16x64xf32>
    %182 = arith.mulf %181, %178 : vector<16x64xf32>
    %183 = arith.mulf %182, %178 : vector<16x64xf32>
    %184 = arith.mulf %183, %178 : vector<16x64xf32>
    %185 = arith.addf %178, %184 : vector<16x64xf32>
    %cst_60 = arith.constant 0.797884583 : f32
    %186 = vector.broadcast %cst_60 : f32 to vector<16x64xf32>
    %187 = arith.mulf %186, %185 : vector<16x64xf32>
    %188 = math.tanh %187 : vector<16x64xf32>
    %cst_61 = arith.constant 1.000000e+00 : f32
    %189 = vector.broadcast %cst_61 : f32 to vector<16x64xf32>
    %190 = arith.addf %189, %188 : vector<16x64xf32>
    %191 = arith.mulf %180, %190 : vector<16x64xf32>
    %c0_62 = arith.constant 0 : index
    %c0_63 = arith.constant 0 : index
    %c0_64 = arith.constant 0 : index
    %192 = vector.load %arg6[%c0_62, %c0_63, %c0_64] : memref<2x64x32xf32, #tpu.memory_space<vmem>>, vector<1x64x32xf32>
    %193 = vector.shape_cast %192 : vector<1x64x32xf32> to vector<64x32xf32>
    %cst_65 = arith.constant dense<0.000000e+00> : vector<16x32xf32>
    %194 = tpu.matmul %191, %193, %cst_65 {dimension_numbers = #tpu.dot_dimension_numbers<[1], [0], [0], [1], [0, 0, 1, 1], [], []>} : vector<16x64xf32>, vector<64x32xf32>, vector<16x32xf32> -> vector<16x32xf32>
    %195 = vector.extract_strided_slice %98 {offsets = [3, 0], sizes = [1, 32], strides = [1, 1]} : vector<8x96xf32> to vector<1x32xf32>
    %196 = vector.broadcast %195 : vector<1x32xf32> to vector<16x32xf32>
    %197 = arith.addf %194, %196 : vector<16x32xf32>
    %198 = arith.addf %197, %172 : vector<16x32xf32>
    %199 = vector.extract_strided_slice %98 {offsets = [6, 0], sizes = [1, 32], strides = [1, 1]} : vector<8x96xf32> to vector<1x32xf32>
    %200 = vector.extract_strided_slice %98 {offsets = [7, 0], sizes = [1, 32], strides = [1, 1]} : vector<8x96xf32> to vector<1x32xf32>
    %cst_66 = arith.constant dense<0.000000e+00> : vector<16xf32>
    %201 = vector.multi_reduction <add>, %198, %cst_66 [1] : vector<16x32xf32> to vector<16xf32>
    %202 = vector.shape_cast %201 : vector<16xf32> to vector<16x1xf32>
    %cst_67 = arith.constant 3.200000e+01 : f32
    %203 = vector.broadcast %cst_67 : f32 to vector<16x1xf32>
    %204 = arith.divf %202, %203 : vector<16x1xf32>
    %205 = vector.broadcast %204 : vector<16x1xf32> to vector<16x32xf32>
    %206 = arith.subf %198, %205 : vector<16x32xf32>
    %207 = arith.mulf %206, %206 : vector<16x32xf32>
    %cst_68 = arith.constant dense<0.000000e+00> : vector<16xf32>
    %208 = vector.multi_reduction <add>, %207, %cst_68 [1] : vector<16x32xf32> to vector<16xf32>
    %209 = vector.shape_cast %208 : vector<16xf32> to vector<16x1xf32>
    %cst_69 = arith.constant 3.200000e+01 : f32
    %210 = vector.broadcast %cst_69 : f32 to vector<16x1xf32>
    %211 = arith.divf %209, %210 : vector<16x1xf32>
    %212 = vector.broadcast %204 : vector<16x1xf32> to vector<16x32xf32>
    %213 = arith.subf %198, %212 : vector<16x32xf32>
    %cst_70 = arith.constant 9.99999974E-6 : f32
    %214 = vector.broadcast %cst_70 : f32 to vector<16x1xf32>
    %215 = arith.addf %211, %214 : vector<16x1xf32>
    %216 = math.rsqrt %215 : vector<16x1xf32>
    %217 = vector.broadcast %216 : vector<16x1xf32> to vector<16x32xf32>
    %218 = arith.mulf %213, %217 : vector<16x32xf32>
    %219 = vector.broadcast %199 : vector<1x32xf32> to vector<16x32xf32>
    %220 = arith.mulf %218, %219 : vector<16x32xf32>
    %221 = vector.broadcast %200 : vector<1x32xf32> to vector<16x32xf32>
    %222 = arith.addf %220, %221 : vector<16x32xf32>
    %c1 = arith.constant 1 : index
    %c0_71 = arith.constant 0 : index
    %c0_72 = arith.constant 0 : index
    %223 = vector.load %arg7[%c1, %c0_71, %c0_72] : memref<2x8x96xf32, #tpu.memory_space<vmem>>, vector<1x8x96xf32>
    %224 = vector.shape_cast %223 : vector<1x8x96xf32> to vector<8x96xf32>
    %c1_73 = arith.constant 1 : index
    %c0_74 = arith.constant 0 : index
    %c0_75 = arith.constant 0 : index
    %225 = vector.load %arg3[%c1_73, %c0_74, %c0_75] : memref<2x32x96xf32, #tpu.memory_space<vmem>>, vector<1x32x96xf32>
    %226 = vector.shape_cast %225 : vector<1x32x96xf32> to vector<32x96xf32>
    %cst_76 = arith.constant dense<0.000000e+00> : vector<16x96xf32>
    %227 = tpu.matmul %222, %226, %cst_76 {dimension_numbers = #tpu.dot_dimension_numbers<[1], [0], [0], [1], [0, 0, 1, 1], [], []>} : vector<16x32xf32>, vector<32x96xf32>, vector<16x96xf32> -> vector<16x96xf32>
    %228 = vector.extract_strided_slice %224 {offsets = [0, 0], sizes = [1, 96], strides = [1, 1]} : vector<8x96xf32> to vector<1x96xf32>
    %229 = vector.broadcast %228 : vector<1x96xf32> to vector<16x96xf32>
    %230 = arith.addf %227, %229 : vector<16x96xf32>
    %231 = vector.extract_strided_slice %230 {offsets = [0, 0], sizes = [16, 16], strides = [1, 1]} : vector<16x96xf32> to vector<16x16xf32>
    %232 = vector.extract_strided_slice %230 {offsets = [0, 32], sizes = [16, 16], strides = [1, 1]} : vector<16x96xf32> to vector<16x16xf32>
    %233 = vector.extract_strided_slice %230 {offsets = [0, 64], sizes = [16, 16], strides = [1, 1]} : vector<16x96xf32> to vector<16x16xf32>
    %cst_77 = arith.constant dense<0.000000e+00> : vector<16x16xf32>
    %234 = tpu.matmul %231, %232, %cst_77 {dimension_numbers = #tpu.dot_dimension_numbers<[1], [1], [0], [0], [0, 0, 1, 0], [], []>} : vector<16x16xf32>, vector<16x16xf32>, vector<16x16xf32> -> vector<16x16xf32>
    %cst_78 = arith.constant 2.500000e-01 : f32
    %235 = vector.broadcast %cst_78 : f32 to vector<16x16xf32>
    %236 = arith.mulf %234, %235 : vector<16x16xf32>
    %237 = arith.addf %236, %96 : vector<16x16xf32>
    %cst_79 = arith.constant dense<0xFF800000> : vector<16xf32>
    %238 = vector.multi_reduction <maximumf>, %237, %cst_79 [1] : vector<16x16xf32> to vector<16xf32>
    %239 = vector.shape_cast %238 : vector<16xf32> to vector<16x1xf32>
    %240 = vector.broadcast %239 : vector<16x1xf32> to vector<16x16xf32>
    %241 = arith.subf %237, %240 : vector<16x16xf32>
    %242 = math.exp %241 : vector<16x16xf32>
    %cst_80 = arith.constant dense<0.000000e+00> : vector<16xf32>
    %243 = vector.multi_reduction <add>, %242, %cst_80 [1] : vector<16x16xf32> to vector<16xf32>
    %244 = vector.shape_cast %243 : vector<16xf32> to vector<16x1xf32>
    %245 = tpu.reciprocal %244 {approx = true} : vector<16x1xf32> -> vector<16x1xf32>
    %246 = vector.broadcast %245 : vector<16x1xf32> to vector<16x16xf32>
    %247 = arith.mulf %242, %246 : vector<16x16xf32>
    %cst_81 = arith.constant dense<0.000000e+00> : vector<16x16xf32>
    %248 = tpu.matmul %247, %233, %cst_81 {dimension_numbers = #tpu.dot_dimension_numbers<[1], [0], [0], [1], [0, 0, 1, 1], [], []>} : vector<16x16xf32>, vector<16x16xf32>, vector<16x16xf32> -> vector<16x16xf32>
    %249 = vector.extract_strided_slice %230 {offsets = [0, 16], sizes = [16, 16], strides = [1, 1]} : vector<16x96xf32> to vector<16x16xf32>
    %250 = vector.extract_strided_slice %230 {offsets = [0, 48], sizes = [16, 16], strides = [1, 1]} : vector<16x96xf32> to vector<16x16xf32>
    %251 = vector.extract_strided_slice %230 {offsets = [0, 80], sizes = [16, 16], strides = [1, 1]} : vector<16x96xf32> to vector<16x16xf32>
    %cst_82 = arith.constant dense<0.000000e+00> : vector<16x16xf32>
    %252 = tpu.matmul %249, %250, %cst_82 {dimension_numbers = #tpu.dot_dimension_numbers<[1], [1], [0], [0], [0, 0, 1, 0], [], []>} : vector<16x16xf32>, vector<16x16xf32>, vector<16x16xf32> -> vector<16x16xf32>
    %cst_83 = arith.constant 2.500000e-01 : f32
    %253 = vector.broadcast %cst_83 : f32 to vector<16x16xf32>
    %254 = arith.mulf %252, %253 : vector<16x16xf32>
    %255 = arith.addf %254, %96 : vector<16x16xf32>
    %cst_84 = arith.constant dense<0xFF800000> : vector<16xf32>
    %256 = vector.multi_reduction <maximumf>, %255, %cst_84 [1] : vector<16x16xf32> to vector<16xf32>
    %257 = vector.shape_cast %256 : vector<16xf32> to vector<16x1xf32>
    %258 = vector.broadcast %257 : vector<16x1xf32> to vector<16x16xf32>
    %259 = arith.subf %255, %258 : vector<16x16xf32>
    %260 = math.exp %259 : vector<16x16xf32>
    %cst_85 = arith.constant dense<0.000000e+00> : vector<16xf32>
    %261 = vector.multi_reduction <add>, %260, %cst_85 [1] : vector<16x16xf32> to vector<16xf32>
    %262 = vector.shape_cast %261 : vector<16xf32> to vector<16x1xf32>
    %263 = tpu.reciprocal %262 {approx = true} : vector<16x1xf32> -> vector<16x1xf32>
    %264 = vector.broadcast %263 : vector<16x1xf32> to vector<16x16xf32>
    %265 = arith.mulf %260, %264 : vector<16x16xf32>
    %cst_86 = arith.constant dense<0.000000e+00> : vector<16x16xf32>
    %266 = tpu.matmul %265, %251, %cst_86 {dimension_numbers = #tpu.dot_dimension_numbers<[1], [0], [0], [1], [0, 0, 1, 1], [], []>} : vector<16x16xf32>, vector<16x16xf32>, vector<16x16xf32> -> vector<16x16xf32>
    %267 = tpu.concatenate %248, %266 in 1 : vector<16x16xf32>, vector<16x16xf32> -> vector<16x32xf32>
    %c1_87 = arith.constant 1 : index
    %c0_88 = arith.constant 0 : index
    %c0_89 = arith.constant 0 : index
    %268 = vector.load %arg4[%c1_87, %c0_88, %c0_89] : memref<2x32x32xf32, #tpu.memory_space<vmem>>, vector<1x32x32xf32>
    %269 = vector.shape_cast %268 : vector<1x32x32xf32> to vector<32x32xf32>
    %cst_90 = arith.constant dense<0.000000e+00> : vector<16x32xf32>
    %270 = tpu.matmul %267, %269, %cst_90 {dimension_numbers = #tpu.dot_dimension_numbers<[1], [0], [0], [1], [0, 0, 1, 1], [], []>} : vector<16x32xf32>, vector<32x32xf32>, vector<16x32xf32> -> vector<16x32xf32>
    %271 = vector.extract_strided_slice %224 {offsets = [1, 0], sizes = [1, 32], strides = [1, 1]} : vector<8x96xf32> to vector<1x32xf32>
    %272 = vector.broadcast %271 : vector<1x32xf32> to vector<16x32xf32>
    %273 = arith.addf %270, %272 : vector<16x32xf32>
    %274 = arith.addf %273, %222 : vector<16x32xf32>
    %275 = vector.extract_strided_slice %224 {offsets = [4, 0], sizes = [1, 32], strides = [1, 1]} : vector<8x96xf32> to vector<1x32xf32>
    %276 = vector.extract_strided_slice %224 {offsets = [5, 0], sizes = [1, 32], strides = [1, 1]} : vector<8x96xf32> to vector<1x32xf32>
    %cst_91 = arith.constant dense<0.000000e+00> : vector<16xf32>
    %277 = vector.multi_reduction <add>, %274, %cst_91 [1] : vector<16x32xf32> to vector<16xf32>
    %278 = vector.shape_cast %277 : vector<16xf32> to vector<16x1xf32>
    %cst_92 = arith.constant 3.200000e+01 : f32
    %279 = vector.broadcast %cst_92 : f32 to vector<16x1xf32>
    %280 = arith.divf %278, %279 : vector<16x1xf32>
    %281 = vector.broadcast %280 : vector<16x1xf32> to vector<16x32xf32>
    %282 = arith.subf %274, %281 : vector<16x32xf32>
    %283 = arith.mulf %282, %282 : vector<16x32xf32>
    %cst_93 = arith.constant dense<0.000000e+00> : vector<16xf32>
    %284 = vector.multi_reduction <add>, %283, %cst_93 [1] : vector<16x32xf32> to vector<16xf32>
    %285 = vector.shape_cast %284 : vector<16xf32> to vector<16x1xf32>
    %cst_94 = arith.constant 3.200000e+01 : f32
    %286 = vector.broadcast %cst_94 : f32 to vector<16x1xf32>
    %287 = arith.divf %285, %286 : vector<16x1xf32>
    %288 = vector.broadcast %280 : vector<16x1xf32> to vector<16x32xf32>
    %289 = arith.subf %274, %288 : vector<16x32xf32>
    %cst_95 = arith.constant 9.99999974E-6 : f32
    %290 = vector.broadcast %cst_95 : f32 to vector<16x1xf32>
    %291 = arith.addf %287, %290 : vector<16x1xf32>
    %292 = math.rsqrt %291 : vector<16x1xf32>
    %293 = vector.broadcast %292 : vector<16x1xf32> to vector<16x32xf32>
    %294 = arith.mulf %289, %293 : vector<16x32xf32>
    %295 = vector.broadcast %275 : vector<1x32xf32> to vector<16x32xf32>
    %296 = arith.mulf %294, %295 : vector<16x32xf32>
    %297 = vector.broadcast %276 : vector<1x32xf32> to vector<16x32xf32>
    %298 = arith.addf %296, %297 : vector<16x32xf32>
    %c1_96 = arith.constant 1 : index
    %c0_97 = arith.constant 0 : index
    %c0_98 = arith.constant 0 : index
    %299 = vector.load %arg5[%c1_96, %c0_97, %c0_98] : memref<2x32x64xf32, #tpu.memory_space<vmem>>, vector<1x32x64xf32>
    %300 = vector.shape_cast %299 : vector<1x32x64xf32> to vector<32x64xf32>
    %cst_99 = arith.constant dense<0.000000e+00> : vector<16x64xf32>
    %301 = tpu.matmul %298, %300, %cst_99 {dimension_numbers = #tpu.dot_dimension_numbers<[1], [0], [0], [1], [0, 0, 1, 1], [], []>} : vector<16x32xf32>, vector<32x64xf32>, vector<16x64xf32> -> vector<16x64xf32>
    %302 = vector.extract_strided_slice %224 {offsets = [2, 0], sizes = [1, 64], strides = [1, 1]} : vector<8x96xf32> to vector<1x64xf32>
    %303 = vector.broadcast %302 : vector<1x64xf32> to vector<16x64xf32>
    %304 = arith.addf %301, %303 : vector<16x64xf32>
    %cst_100 = arith.constant 5.000000e-01 : f32
    %305 = vector.broadcast %cst_100 : f32 to vector<16x64xf32>
    %306 = arith.mulf %305, %304 : vector<16x64xf32>
    %cst_101 = arith.constant 4.471500e-02 : f32
    %307 = vector.broadcast %cst_101 : f32 to vector<16x64xf32>
    %308 = arith.mulf %307, %304 : vector<16x64xf32>
    %309 = arith.mulf %308, %304 : vector<16x64xf32>
    %310 = arith.mulf %309, %304 : vector<16x64xf32>
    %311 = arith.addf %304, %310 : vector<16x64xf32>
    %cst_102 = arith.constant 0.797884583 : f32
    %312 = vector.broadcast %cst_102 : f32 to vector<16x64xf32>
    %313 = arith.mulf %312, %311 : vector<16x64xf32>
    %314 = math.tanh %313 : vector<16x64xf32>
    %cst_103 = arith.constant 1.000000e+00 : f32
    %315 = vector.broadcast %cst_103 : f32 to vector<16x64xf32>
    %316 = arith.addf %315, %314 : vector<16x64xf32>
    %317 = arith.mulf %306, %316 : vector<16x64xf32>
    %c1_104 = arith.constant 1 : index
    %c0_105 = arith.constant 0 : index
    %c0_106 = arith.constant 0 : index
    %318 = vector.load %arg6[%c1_104, %c0_105, %c0_106] : memref<2x64x32xf32, #tpu.memory_space<vmem>>, vector<1x64x32xf32>
    %319 = vector.shape_cast %318 : vector<1x64x32xf32> to vector<64x32xf32>
    %cst_107 = arith.constant dense<0.000000e+00> : vector<16x32xf32>
    %320 = tpu.matmul %317, %319, %cst_107 {dimension_numbers = #tpu.dot_dimension_numbers<[1], [0], [0], [1], [0, 0, 1, 1], [], []>} : vector<16x64xf32>, vector<64x32xf32>, vector<16x32xf32> -> vector<16x32xf32>
    %321 = vector.extract_strided_slice %224 {offsets = [3, 0], sizes = [1, 32], strides = [1, 1]} : vector<8x96xf32> to vector<1x32xf32>
    %322 = vector.broadcast %321 : vector<1x32xf32> to vector<16x32xf32>
    %323 = arith.addf %320, %322 : vector<16x32xf32>
    %324 = arith.addf %323, %298 : vector<16x32xf32>
    %325 = vector.extract_strided_slice %224 {offsets = [6, 0], sizes = [1, 32], strides = [1, 1]} : vector<8x96xf32> to vector<1x32xf32>
    %326 = vector.extract_strided_slice %224 {offsets = [7, 0], sizes = [1, 32], strides = [1, 1]} : vector<8x96xf32> to vector<1x32xf32>
    %cst_108 = arith.constant dense<0.000000e+00> : vector<16xf32>
    %327 = vector.multi_reduction <add>, %324, %cst_108 [1] : vector<16x32xf32> to vector<16xf32>
    %328 = vector.shape_cast %327 : vector<16xf32> to vector<16x1xf32>
    %cst_109 = arith.constant 3.200000e+01 : f32
    %329 = vector.broadcast %cst_109 : f32 to vector<16x1xf32>
    %330 = arith.divf %328, %329 : vector<16x1xf32>
    %331 = vector.broadcast %330 : vector<16x1xf32> to vector<16x32xf32>
    %332 = arith.subf %324, %331 : vector<16x32xf32>
    %333 = arith.mulf %332, %332 : vector<16x32xf32>
    %cst_110 = arith.constant dense<0.000000e+00> : vector<16xf32>
    %334 = vector.multi_reduction <add>, %333, %cst_110 [1] : vector<16x32xf32> to vector<16xf32>
    %335 = vector.shape_cast %334 : vector<16xf32> to vector<16x1xf32>
    %cst_111 = arith.constant 3.200000e+01 : f32
    %336 = vector.broadcast %cst_111 : f32 to vector<16x1xf32>
    %337 = arith.divf %335, %336 : vector<16x1xf32>
    %338 = vector.broadcast %330 : vector<16x1xf32> to vector<16x32xf32>
    %339 = arith.subf %324, %338 : vector<16x32xf32>
    %cst_112 = arith.constant 9.99999974E-6 : f32
    %340 = vector.broadcast %cst_112 : f32 to vector<16x1xf32>
    %341 = arith.addf %337, %340 : vector<16x1xf32>
    %342 = math.rsqrt %341 : vector<16x1xf32>
    %343 = vector.broadcast %342 : vector<16x1xf32> to vector<16x32xf32>
    %344 = arith.mulf %339, %343 : vector<16x32xf32>
    %345 = vector.broadcast %325 : vector<1x32xf32> to vector<16x32xf32>
    %346 = arith.mulf %344, %345 : vector<16x32xf32>
    %347 = vector.broadcast %326 : vector<1x32xf32> to vector<16x32xf32>
    %348 = arith.addf %346, %347 : vector<16x32xf32>
    %c152 = arith.constant 152 : index
    %c0_113 = arith.constant 0 : index
    %349 = vector.load %arg2[%c152, %c0_113] : memref<184x32xf32, #tpu.memory_space<vmem>>, vector<32x3xf32>
    %c147 = arith.constant 147 : index
    %c0_114 = arith.constant 0 : index
    %350 = vector.load %arg2[%c147, %c0_114] : memref<184x32xf32, #tpu.memory_space<vmem>>, vector<1x3xf32>
    %cst_115 = arith.constant dense<0.000000e+00> : vector<16x3xf32>
    %351 = tpu.matmul %348, %349, %cst_115 {dimension_numbers = #tpu.dot_dimension_numbers<[1], [0], [0], [1], [0, 0, 1, 1], [], []>} : vector<16x32xf32>, vector<32x3xf32>, vector<16x3xf32> -> vector<16x3xf32>
    %352 = vector.broadcast %350 : vector<1x3xf32> to vector<16x3xf32>
    %353 = arith.addf %351, %352 : vector<16x3xf32>
    %cst_116 = arith.constant dense<0xFF800000> : vector<16xf32>
    %354 = vector.multi_reduction <maximumf>, %353, %cst_116 [1] : vector<16x3xf32> to vector<16xf32>
    %355 = vector.shape_cast %354 : vector<16xf32> to vector<16x1xf32>
    %356 = tpu.iota {dimensions = array<i32: 1>} : vector<16x3xi32>
    %357 = vector.broadcast %355 : vector<16x1xf32> to vector<16x3xf32>
    %358 = arith.cmpf oeq, %353, %357 : vector<16x3xf32>
    %c1073741824_i32 = arith.constant 1073741824 : i32
    %359 = vector.broadcast %c1073741824_i32 : i32 to vector<16x3xi32>
    %360 = arith.select %358, %356, %359 : vector<16x3xi1>, vector<16x3xi32>
    %cst_117 = arith.constant dense<2147483647> : vector<16xi32>
    %361 = vector.multi_reduction <minsi>, %360, %cst_117 [1] : vector<16x3xi32> to vector<16xi32>
    %362 = vector.shape_cast %361 : vector<16xi32> to vector<16x1xi32>
    %c0_118 = arith.constant 0 : index
    %c0_119 = arith.constant 0 : index
    %363 = vector.load %arg8[%c0_118, %c0_119] : memref<16x1xi32, #tpu.memory_space<vmem>>, vector<16x1xi32>
    tpu.vector_store %arg8[%c0_118, %c0_119], %362 {strides = array<i32>} : memref<16x1xi32, #tpu.memory_space<vmem>>, vector<16x1xi32>,
    return
  }
}

</mosaic_0001>

<bundles_post_ra>
// kernel: keyword_model_forward.1
= control target key start
LH: loop header
LB: loop body
LE: loop exit
PB: predicated region body
PF: predicated region fallthrough
CT: control target
= control target key end

     0   :  { %13 = vsyncpa [#allocation3], 0  ;;  %s3661_s0 = inlined_call_operand.vmem [shape: s32[16,1], index: 0, kind: input, shape index: {}]   ;;  %s3662_s1 = inlined_call_operand.vmem [shape: f32[1,16], index: 1, kind: input, shape index: {}]   ;;  %s3663_s2 = inlined_call_operand.hbm [shape: f32[184,32], index: 2, kind: input, shape index: {}]   ;;  %s3664_s3 = inlined_call_operand.hbm [shape: f32[2,32,96], index: 3, kind: input, shape index: {}]   ;;  %s3665_s4 = inlined_call_operand.hbm [shape: f32[2,32,32], index: 4, kind: input, shape index: {}]   ;;  %s3666_s5 = inlined_call_operand.hbm [shape: f32[2,32,64], index: 5, kind: input, shape index: {}]   ;;  %s3667_s6 = inlined_call_operand.hbm [shape: f32[2,64,32], index: 6, kind: input, shape index: {}]   ;;  %s3668_s7 = inlined_call_operand.vmem [shape: f32[2,8,96], index: 7, kind: input, shape index: {}]   ;;  %s3669_s8 = inlined_call_operand.vmem [shape: s32[16,1], index: 8, kind: output, shape index: {}]  }
   0x1   :  { %14 = vsyncpa [#allocation5], 0 }
   0x2   :  { %15 = vsyncpa [#allocation8], 0  ;;  %s3210_s27 = smov [#allocation4]   ;;  %s3211_s29 = smov [#allocation7]  }
   0x3   :  { %s37_s28 = sshll.u32 %s3210_s27, 4  ;;  %s61_s30 = sshll.u32 %s3211_s29, 4  ;;  %s38_s28 = int_to_ptr.vmem [resolvable:$true] %s37_s28  ;;  %s3271_s30 = int_to_ptr.vmem [resolvable:$true] %s61_s30 }
   0x4   :  { %s3094_s11 = scalar_lea.hbm %s3664_s3, 1024 }
   0x5   :  { %p3095_p0 = scmp.ne.s32.totalorder %s3664_s3, %s3094_s11  ;;  %p3098_p1 = scmp.lt.u32.totalorder %s3094_s11, %s3664_s3 }
   0x7   :  { %p3100_p2 = pnand %p3098_p1, %p3095_p0 }
   0x9   :  { %3103 = shalt.err (!%p3100_p2)
}
   0xa   :  { %s3104_s16 = scalar_lea.vmem %s38_s28, 1024  ;;  %p3109_p4 = scmp.lt.s32.totalorder %s38_s28, %s38_s28 }
   0xb   :  { %p3105_p3 = scmp.ne.s32.totalorder %s38_s28, %s3104_s16  ;;  %p3110_p5 = scmp.lt.s32.totalorder %s3104_s16, %s3104_s16 }
   0xd   :  { %p3111_p6 = por %p3110_p5, %p3109_p4 }
   0xf   :  { %p3112_p7 = pnand %p3111_p6, %p3105_p3 }
  0x11   :  { %3115 = shalt.err (!%p3112_p7)
}
  0x12   :  { %s3212_s17 = smov 128   ;;  %s3213_s18 = smov 8  }
  0x13   :  { %43 = dma.hbm_to_vmem [thread:$0]  %s3664_s3, 1024, %s38_s28, [#allocation5], %s3212_s17, %s3212_s17, %s3213_s18  }
  0x14   :  { %s3116_s23 = scalar_lea.hbm %s3666_s5, 1024 }
  0x15   :  { %p3117_p8 = scmp.ne.s32.totalorder %s3666_s5, %s3116_s23  ;;  %p3120_p9 = scmp.lt.u32.totalorder %s3116_s23, %s3666_s5 }
  0x17   :  { %p3122_p10 = pnand %p3120_p9, %p3117_p8 }
  0x19   :  { %3125 = shalt.err (!%p3122_p10)
}
  0x1a   :  { %s3126_s29 = scalar_lea.vmem %s3271_s30, 1024  ;;  %p3131_p12 = scmp.lt.s32.totalorder %s3271_s30, %s3271_s30 }
  0x1b   :  { %p3127_p11 = scmp.ne.s32.totalorder %s3271_s30, %s3126_s29  ;;  %p3132_p13 = scmp.lt.s32.totalorder %s3126_s29, %s3126_s29 }
  0x1d   :  { %p3133_p0 = por %p3132_p13, %p3131_p12 }
  0x1f   :  { %p3134_p1 = pnand %p3133_p0, %p3127_p11 }
  0x21   :  { %3137 = shalt.err (!%p3134_p1)
}
  0x22   :  { %67 = dma.hbm_to_vmem [thread:$0]  %s3666_s5, 1024, %s3271_s30, [#allocation8], %s3212_s17, %s3212_s17, %s3213_s18  }
  0x23   :  { %s3214_s9 = smov [#allocation2]   ;;  %s3215_s11 = smov [#allocation6]  }
  0x24   :  { %s25_s10 = sshll.u32 %s3214_s9, 4  ;;  %s49_s12 = sshll.u32 %s3215_s11, 4  ;;  %s26_s10 = int_to_ptr.vmem [resolvable:$true] %s25_s10  ;;  %s3308_s12 = int_to_ptr.vmem [resolvable:$true] %s49_s12 }
  0x25   :  { %s3138_s15 = scalar_lea.hbm %s3663_s2, 2944 }
  0x26   :  { %p3139_p2 = scmp.ne.s32.totalorder %s3663_s2, %s3138_s15  ;;  %p3142_p3 = scmp.lt.u32.totalorder %s3138_s15, %s3663_s2 }
  0x28   :  { %p3144_p4 = pnand %p3142_p3, %p3139_p2 }
  0x2a   :  { %3147 = shalt.err (!%p3144_p4)
}
  0x2b   :  { %s3148_s5 = scalar_lea.vmem %s26_s10, 2944  ;;  %p3153_p6 = scmp.lt.s32.totalorder %s26_s10, %s26_s10 }
  0x2c   :  { %p3149_p5 = scmp.ne.s32.totalorder %s26_s10, %s3148_s5  ;;  %p3154_p7 = scmp.lt.s32.totalorder %s3148_s5, %s3148_s5 }
  0x2e   :  { %p3155_p8 = por %p3154_p7, %p3153_p6 }
  0x30   :  { %p3156_p9 = pnand %p3155_p8, %p3149_p5 }
  0x32   :  { %3159 = shalt.err (!%p3156_p9)
}
  0x33   :  { %31 = dma.hbm_to_vmem [thread:$0]  %s3663_s2, 2944, %s26_s10, [#allocation3], %s3212_s17, %s3212_s17, %s3213_s18  }
  0x34   :  { %s3160_s25 = scalar_lea.hbm %s3665_s4, 1024 }
  0x35   :  { %p3161_p10 = scmp.ne.s32.totalorder %s3665_s4, %s3160_s25  ;;  %p3164_p11 = scmp.lt.u32.totalorder %s3160_s25, %s3665_s4 }
  0x37   :  { %p3166_p12 = pnand %p3164_p11, %p3161_p10 }
  0x39   :  { %3169 = shalt.err (!%p3166_p12)
}
  0x3a   :  { %s3170_s28 = scalar_lea.vmem %s3308_s12, 1024  ;;  %p3175_p0 = scmp.lt.s32.totalorder %s3308_s12, %s3308_s12 }
  0x3b   :  { %p3171_p13 = scmp.ne.s32.totalorder %s3308_s12, %s3170_s28  ;;  %p3176_p1 = scmp.lt.s32.totalorder %s3170_s28, %s3170_s28 }
  0x3d   :  { %p3177_p2 = por %p3176_p1, %p3175_p0 }
  0x3f   :  { %p3178_p3 = pnand %p3177_p2, %p3171_p13 }
  0x41   :  { %3181 = shalt.err (!%p3178_p3)
}
  0x42   :  { %55 = dma.hbm_to_vmem [thread:$0]  %s3665_s4, 1024, %s3308_s12, [#allocation5], %s3212_s17, %s3212_s17, %s3213_s18  }
  0x43   :  { %s3216_s10 = smov [#allocation9]   ;;  %s3182_s15 = scalar_lea.hbm %s3667_s6, 2048 }
  0x44   :  { %s73_s11 = sshll.u32 %s3216_s10, 4  ;;  %p3183_p4 = scmp.ne.s32.totalorder %s3667_s6, %s3182_s15  ;;  %s74_s11 = int_to_ptr.vmem [resolvable:$true] %s73_s11 }
  0x45   :  { %p3186_p5 = scmp.lt.u32.totalorder %s3182_s15, %s3667_s6 }
  0x47   :  { %p3188_p6 = pnand %p3186_p5, %p3183_p4 }
  0x49   :  { %3191 = shalt.err (!%p3188_p6)
}
  0x4a   :  { %s3192_s5 = scalar_lea.vmem %s74_s11, 2048  ;;  %p3197_p8 = scmp.lt.s32.totalorder %s74_s11, %s74_s11 }
  0x4b   :  { %p3193_p7 = scmp.ne.s32.totalorder %s74_s11, %s3192_s5  ;;  %p3198_p9 = scmp.lt.s32.totalorder %s3192_s5, %s3192_s5 }
  0x4d   :  { %p3199_p10 = por %p3198_p9, %p3197_p8 }
  0x4f   :  { %p3200_p11 = pnand %p3199_p10, %p3193_p7 }
  0x51   :  { %3203 = shalt.err (!%p3200_p11)
}
  0x52   :  { %79 = dma.hbm_to_vmem [thread:$0]  %s3667_s6, 2048, %s74_s11, [#allocation8], %s3212_s17, %s3212_s17, %s3213_s18  }
  0x53   :  { %3204 = dma.done.wait [#allocation3], 2944  }
  0x54   :  { %3205 = vsyncadd [#allocation3], 4294964352 }
  0x55   :  { %3206 = dma.done.wait [#allocation5], 2048  }
  0x56   :  { %3207 = vsyncadd [#allocation5], 4294965248 }
  0x57   :  { %3208 = dma.done.wait [#allocation8], 3072  }
  0x58   :  { %3209 = vsyncadd [#allocation8], 4294964224  ;;  %v3217_v0 = vmov 0   ;;  %v3363_v1 = vld [vmem:[%s3661_s0] sm:$0xff]  ;;  %v3368_v2 = vld [vmem:[%s3661_s0 + $0x8] sm:$0xff]  ;;  %v3218_v3 = vmov 0.0   ;;  %v97_v8 = vlaneseq }
  0x59   :  { %2987 = vset.pattern.permute.xlu0 %v3217_v0  ;;  %2993 = vset.pattern.permute.xlu1 %v3217_v0  ;;  %vm153_vm0 = vcmp.ne.s32.totalorder %v3363_v1, 1  ;;  %vm154_vm1 = vcmp.ne.s32.totalorder %v3368_v2, 1  ;;  %v493_v6 = vld [vmem:[%s3662_s1] sm:$0x1]  ;;  %vm175_vm5 = vcmask 130048   ;;  %v275_v24 = vld [vmem:[#allocation2 + $0x68] sm:$0xff] }
  0x5a   :  { %v2404_v4 = vsel %vm153_vm0, 1.0, %v3218_v3  ;;  %v2405_v5 = vsel %vm154_vm1, 1.0, %v3218_v3  ;;  %vm494_vm2 = vcmp.gt.f32.partialorder %v493_v6, 0.5  ;;  %v3377_v9 = vshrl.u32 %v97_v8, 7  ;;  %v276_v25 = vld [vmem:[#allocation2 + $0x70] sm:$0xff]  ;;  %v277_v26 = vld [vmem:[#allocation2 + $0x78] sm:$0xff] }
  0x5b   :  { %v2988_v7 = vpack.i.bf16 %v2405_v5, %v2404_v4  ;;  %v3379_v10 = vand.u32 127, %v97_v8  ;;  %v495_v11 = vsel %vm494_vm2, 1, %v3217_v0  ;;  %v2805_v27 = vpack.c.bf16 %v276_v25, %v275_v24  ;;  %v278_v28 = vld [vmem:[#allocation2 + $0x80] sm:$0xff]  ;;  %v279_v40 = vld [vmem:[#allocation2 + $0x88] sm:$0xff]  ;;  %v142_v45 = vld [vmem:[#allocation2 + $0x10] sm:$0xff]  ;;  %s3219_s18 = smov 96  }
  0x5c   :  { %v3385_v12 = vsub.s32 0, %v3377_v9  ;;  %v99_v18 = vadd.s32 8, %v3377_v9  ;;  %v2809_v29 = vpack.c.bf16 %v278_v28, %v277_v26  ;;  %v140_v41 = vld [vmem:[#allocation2] sm:$0xff]  ;;  %v141_v42 = vld [vmem:[#allocation2 + $0x8] sm:$0xff]  ;;  %v143_v46 = vld [vmem:[#allocation2 + $0x18] sm:$0xff]  ;;  %vm280_vm0 = vcmask 326656  }
  0x5d   :  { %2989 = vperm.xlu0 %2987, %v2988_v7   ;;  %vm109_vm3 = vcmp.lt.s32.totalorder %v3379_v10, 8  ;;  %vm159_vm4 = vcmp.le.s32.totalorder %v3379_v10, %v3377_v9  ;;  %vm119_vm6 = vcmp.ge.s32.totalorder %v3379_v10, 8  ;;  %vm120_vm7 = vcmp.lt.s32.totalorder %v3379_v10, 16  ;;  %v144_v52 = vld [vmem:[#allocation2 + $0x20] sm:$0xff]  ;;  %v145_v53 = vld [vmem:[#allocation2 + $0x28] sm:$0xff]  ;;  %v146_v56 = vld [vmem:[#allocation2 + $0x30] sm:$0xff] }
  0x5e   :  { %vm161_vm8 = vmand %vm109_vm3, %vm159_vm4  ;;  %v499_v14 = vrot.slane %v495_v11, %v3385_v12  ;;  %vm160_vm13 = vcmp.le.s32.totalorder %v3379_v10, %v99_v18  ;;  %v2813_v43 = vpack.c.bf16 %v141_v42, %v140_v41  ;;  %v2817_v49 = vpack.c.bf16 %v143_v46, %v142_v45  ;;  %v147_v57 = vld [vmem:[#allocation2 + $0x38] sm:$0xff]  ;;  %v148_v59 = vld [vmem:[#allocation2 + $0x40] sm:$0xff]  ;;  %s3220_s25 = smov 80   ;;  %s3221_s26 = smov 112  }
  0x5f   :  { %v163_v13 = vsel %vm161_vm8, 1.0, %v3218_v3  ;;  %vm3392_vm9 = vmand %vm119_vm6, %vm120_vm7  ;;  %vm365_vm2 = vcmask 850944   ;;  %v2821_v55 = vpack.c.bf16 %v145_v53, %v144_v52  ;;  %v2825_v58 = vpack.c.bf16 %v147_v57, %v146_v56  ;;  %v149_v60 = vld [vmem:[#allocation2 + $0x48] sm:$0xff]  ;;  %v150_v62 = vld [vmem:[#allocation2 + $0x50] sm:$0xff]  ;;  %s3223_s27 = smov 64   ;;  %s3224_s29 = smov 48  }
  0x60   :  { %2585 = vmatprep.mubr.msk.f32.mxu1 %vm175_vm5, %v163_v13  ;;  %vm3396_vm10 = vcmp.eq.s32.totalorder %v499_v14, 1  ;;  %vm162_vm14 = vmand %vm3392_vm9, %vm160_vm13  ;;  %v2829_v61 = vpack.c.bf16 %v149_v60, %v148_v59  ;;  %v151_v63 = vld [vmem:[#allocation2 + $0x58] sm:$0xff]  ;;  %vm453_vm6 = vcmask 261120   ;;  %v507_v28 = vld [vmem:[#allocation4 + $0x8] sm:$0xff]  ;;  %s3225_s3 = smov 16   ;;  %vm1259_vm8 = vcmask 523264  }
  0x61   :  { %vm3402_vm11 = vmand %vm109_vm3, %vm3396_vm10  ;;  %v164_v23 = vsel %vm162_vm14, 1.0, %v3218_v3  ;;  %v2833_v0 = vpack.c.bf16 %v151_v63, %v150_v62  ;;  %v3222_v62 = vmov -1e+09   ;;  %vm2392_vm13 = vcmask 7168  }
  0x62   :  { %vm502_vm12 = vmand %vm3392_vm9, %vm3396_vm10  ;;  %v3469_v63 = vsel %vm3402_vm11, 0.0, %v3222_v62 }
  0x63   :  { %vm3458_vm7 = vmpackc.low %vm175_vm5, %vm175_vm5 }
  0xdc   :  { %v2990_v19 = vpop.permute.xlu0 %2989 }
  0xdd   :  { %v2992_v20 = vunpack.i.h.bf16 %v2990_v19  ;;  %v2991_v21 = vunpack.i.l.bf16 %v2990_v19 }
  0xdf   :  { %v2801_v22 = vpack.c.bf16 %v2992_v20, %v2991_v21 }
  0xe1   :  { %2802 = vmatprep.subr.bf16.mxu1 %v2801_v22 }
  0xe2   :  { %2804 = vmatpush3.bf16.msra.mxu1 %v2801_v22 }
  0xe3   :  { %2806 = vmatprep.subr.bf16.mxu1 %v2805_v27 }
  0xe5   :  { %2586 = vmatmul.mubr.msk.f32.vlgmr.msra.gmra.mrb[0].mxu1 %vm175_vm5, %v164_v23 }
  0xe6   :  { %2808 = vmatpush3.bf16.msra.mxu1 %v2805_v27  ;;  %v506_v27 = vld [vmem:[#allocation4] sm:$0xff] }
  0xe7   :  { %2810 = vmatprep.subr.bf16.mxu1 %v2809_v29 }
  0xea   :  { %2812 = vmatpush3.bf16.msra.mxu1 %v2809_v29  ;;  %v508_v29 = vld [vmem:[#allocation4 + $0x10] sm:$0xff] }
  0xeb   :  { %2596 = vmatprep.subr.mxu1 %v279_v40 }
  0xee   :  { %2597 = vmatpush3.msra.mxu1 %v279_v40  ;;  %v2415_v40 = vld [vmem:[#allocation2 + $0x91] ss:$0 sm:$0xff] }
  0xef   :  { %2814 = vmatprep.subr.bf16.mxu1 %v2813_v43 }
 0x1b8   :  { %v2587_v30 = vpop.f32.mrb[0].mxu1 }
 0x1b9   :  { %v258_v31 = vmul.f32 %v2587_v30, %v2405_v5  ;;  %v248_v32 = vpop.f32.mrb[1].mxu1  ;;  %v2414_v5 = vld [vmem:[#allocation2 + $0x90] ss:$0 sm:$0xff]  ;;  %v2837_v30 = vpack.c.bf16 %v507_v28, %v506_v27 }
 0x1ba   :  { %v257_v33 = vmul.f32 %v2404_v4, %v248_v32 }
 0x1bb   :  { %v2969_v34 = vtrunc.f32 %v258_v31  ;;  %v509_v31 = vld [vmem:[#allocation4 + $0x18] sm:$0xff]  ;;  %2838 = vmatprep.subr.bf16.mxu0 %v2837_v30 }
 0x1bc   :  { %v2967_v35 = vtrunc.f32 %v257_v33  ;;  %v2841_v32 = vpack.c.bf16 %v509_v31, %v508_v29  ;;  %2840 = vmatpush3.bf16.msra.mxu0 %v2837_v30 }
 0x1bd   :  { %v2970_v36 = vcvt.f32.s32 %v2969_v34 }
 0x1be   :  { %v2968_v37 = vcvt.f32.s32 %v2967_v35  ;;  %2842 = vmatprep.subr.bf16.mxu0 %v2841_v32 }
 0x1bf   :  { %v262_v38 = vadd.s32 1, %v2970_v36 }
 0x1c0   :  { %v261_v39 = vadd.s32 1, %v2968_v37  ;;  %2844 = vmatpush3.bf16.msra.mxu0 %v2841_v32 }
 0x1c1   :  { %267 = vperm.xlu1 %2993, %v262_v38  }
 0x1c2   :  { %264 = vperm.xlu0 %2987, %v261_v39  }
 0x1c5   :  { %129 = vperm.xlu1 %2993, %v3363_v1  }
 0x1c6   :  { %132 = vperm.xlu0 %2987, %v3368_v2   ;;  %v152_v2 = vld [vmem:[#allocation2 + $0x60] sm:$0xff] }
 0x240   :  { %v268_v44 = vpop.permute.xlu1 %267 }
 0x241   :  { %vm270_vm15 = vcmp.eq.s32.totalorder %v268_v44, %v3379_v10  ;;  %v265_v47 = vpop.permute.xlu0 %264  ;;  %v2416_v44 = vld [vmem:[#allocation2 + $0x92] ss:$0 sm:$0xff] }
 0x242   :  { %vm269_vm1 = vcmp.eq.s32.totalorder %v265_v47, %v3379_v10  ;;  %v2409_v50 = vsel %vm270_vm15, 1.0, %v3218_v3 }
 0x243   :  { %v2408_v48 = vsel %vm269_vm1, 1.0, %v3218_v3 }
 0x244   :  { %v130_v51 = vpop.permute.xlu1 %129  ;;  %2598 = vmatprep.mubr.msk.f32.mxu1 %vm280_vm0, %v2408_v48 }
 0x245   :  { %vm134_vm3 = vcmp.eq.s32.totalorder %v130_v51, %v3379_v10  ;;  %2599 = vmatmul.mubr.msk.f32.vlgmr.msra.gmra.mrb[2].mxu1 %vm280_vm0, %v2409_v50  ;;  %v133_v1 = vpop.permute.xlu0 %132 }
 0x246   :  { %v2402_v54 = vsel %vm134_vm3, 1.0, %v3218_v3  ;;  %2816 = vmatpush3.bf16.msra.mxu1 %v2813_v43  ;;  %vm135_vm4 = vcmp.eq.s32.totalorder %v133_v1, %v3379_v10 }
 0x247   :  { %2627 = vmatprep.mubr.msk.f32.mxu1 %vm365_vm2, %v2402_v54  ;;  %2818 = vmatprep.subr.bf16.mxu1 %v2817_v49  ;;  %v2403_v4 = vsel %vm135_vm4, 1.0, %v3218_v3 }
 0x24a   :  { %2820 = vmatpush3.bf16.msra.mxu1 %v2817_v49  ;;  %v3443_v49 = vld [vmem:[%s3668_s7] sm:$0xff] }
 0x24b   :  { %2822 = vmatprep.subr.bf16.mxu1 %v2821_v55  ;;  %v513_v50 = vrot.slane %v3443_v49, %v3385_v12 }
 0x24e   :  { %2824 = vmatpush3.bf16.msra.mxu1 %v2821_v55 }
 0x24f   :  { %2826 = vmatprep.subr.bf16.mxu1 %v2825_v58 }
 0x252   :  { %2828 = vmatpush3.bf16.msra.mxu1 %v2825_v58 }
 0x253   :  { %2830 = vmatprep.subr.bf16.mxu1 %v2829_v61 }
 0x256   :  { %2832 = vmatpush3.bf16.msra.mxu1 %v2829_v61 }
 0x257   :  { %2834 = vmatprep.subr.bf16.mxu1 %v2833_v0 }
 0x25a   :  { %2836 = vmatpush3.bf16.msra.mxu1 %v2833_v0 }
 0x25b   :  { %2625 = vmatprep.subr.mxu1 %v152_v2 }
 0x25e   :  { %2626 = vmatpush3.msra.mxu1 %v152_v2 }
 0x25f   :  { %2628 = vmatmul.mubr.msk.f32.vlgmr.msra.gmra.mrb[2].mxu1 %vm365_vm2, %v2403_v4  ;;  %v3476_v4 = vsel %vm502_vm12, 0.0, %v3222_v62 }
 0x332   :  { %v2629_v6 = vpop.f32.mrb[2].mxu1 }
 0x333   :  { %v452_v7 = vadd.f32 %v2629_v6, %v2414_v5  ;;  %v438_v8 = vpop.f32.mrb[3].mxu1 }
 0x334   :  { %v451_v11 = vadd.f32 %v2414_v5, %v438_v8 }
 0x335   :  { %v457_v13 = vsel %vm453_vm6, %v452_v7, 0.0 }
 0x336   :  { %458 = vadd.xlane.f32.xlu0 %v457_v13  ;;  %v454_v14 = vsel %vm453_vm6, %v451_v11, 0.0 }
 0x337   :  { %455 = vadd.xlane.f32.xlu1 %v454_v14 }
 0x3c3   :  { %v459_v18 = vpop.xlane.xlu0 %458 }
 0x3c4   :  { %v462_v19 = vmul.f32 0.03125, %v459_v18  ;;  %v456_v20 = vpop.xlane.xlu1 %455 }
 0x3c5   :  { %v461_v21 = vmul.f32 0.03125, %v456_v20 }
 0x3c6   :  { %v464_v3 = vsub.f32 %v452_v7, %v462_v19 }
 0x3c7   :  { %v463_v22 = vsub.f32 %v451_v11, %v461_v21 }
 0x3c8   :  { %v466_v23 = vmul.f32 %v464_v3, %v464_v3 }
 0x3c9   :  { %v465_v24 = vmul.f32 %v463_v22, %v463_v22 }
 0x3ca   :  { %v470_v25 = vsel %vm453_vm6, %v466_v23, 0.0 }
 0x3cb   :  { %471 = vadd.xlane.f32.xlu1 %v470_v25  ;;  %v467_v26 = vsel %vm453_vm6, %v465_v24, 0.0 }
 0x3cc   :  { %468 = vadd.xlane.f32.xlu0 %v467_v26 }
 0x458   :  { %v472_v33 = vpop.xlane.xlu1 %471 }
 0x459   :  { %v474_v34 = vmul.f32 0.03125, %v472_v33  ;;  %v469_v35 = vpop.xlane.xlu0 %468 }
 0x45a   :  { %v473_v36 = vmul.f32 0.03125, %v469_v35 }
 0x45b   :  { %v476_v37 = vadd.f32 1e-05, %v474_v34 }
 0x45c   :  { %v475_v38 = vadd.f32 1e-05, %v473_v36 }
 0x45d   :  { %3034 = vrsqrt.f32 %v476_v37 }
 0x45e   :  { %3036 = vrsqrt.f32 %v475_v38 }
 0x467   :  { %v3035_v39 = vpop.eup %3034 }
 0x468   :  { %v3037_v41 = vpop.eup %3036  ;;  %v480_v42 = vmul.f32 %v3035_v39, %v464_v3 }
 0x469   :  { %v479_v43 = vmul.f32 %v3037_v41, %v463_v22 }
 0x46a   :  { %v486_v45 = vmul.f32 %v2415_v40, %v480_v42 }
 0x46b   :  { %v485_v46 = vmul.f32 %v2415_v40, %v479_v43 }
 0x46c   :  { %v3434_v48 = vadd.f32 %v2416_v44, %v486_v45 }
 0x46d   :  { %v3432_v47 = vadd.f32 %v2416_v44, %v485_v46 }
 0x46f   :  { %2638 = vmatprep.mubr.msk.f32.mxu0 %vm453_vm6, %v3432_v47 }
 0x470   :  { %2639 = vmatmul.mubr.msk.f32.vlgmr.msra.gmra.mrb[0].mxu0 %vm453_vm6, %v3434_v48 }
 0x543   :  { %v2640_v51 = vpop.f32.mrb[0].mxu0 }
 0x544   :  { %v592_v52 = vadd.f32 %v2640_v51, %v513_v50  ;;  %v586_v53 = vpop.f32.mrb[1].mxu0 }
 0x545   :  { %v587_v54 = vadd.f32 %v586_v53, %v513_v50 }
 0x547   :  { %2645 = vmatprep.mubr.msk.f32.mxu0 %vm175_vm5, %v587_v54  ;;  %v3448_v55 = vpack.i.bf16 %v592_v52, %v587_v54 }
 0x549   :  { %2995 = vrot.lane.b32.xlu0 %v3448_v55, %s3219_s18 }
 0x54d   :  { %3005 = vrot.lane.b32.xlu0 %v3448_v55, %s3220_s25 }
 0x551   :  { %797 = vrot.lane.b32.xlu0 %v587_v54, %s3221_s26 }
 0x555   :  { %799 = vrot.lane.b32.xlu0 %v592_v52, %s3221_s26 }
 0x5bb   :  { %v2996_v56 = vpop.permute.xlu0 %2995 }
 0x5bc   :  { %v2998_v57 = vunpack.i.h.bf16 %v2996_v56  ;;  %v2997_v58 = vunpack.i.l.bf16 %v2996_v56 }
 0x5be   :  { %v2845_v60 = vpack.c.bf16 %v2998_v57, %v2997_v58 }
 0x5bf   :  { %v3006_v23 = vpop.permute.xlu0 %3005 }
 0x5c0   :  { %2847 = vmatprep.subr.msk.bf16.mxu0 %vm3458_vm7, %v2845_v60  ;;  %v3008_v25 = vunpack.i.h.bf16 %v3006_v23  ;;  %v3007_v26 = vunpack.i.l.bf16 %v3006_v23 }
 0x5c1   :  { %2850 = vmatpush3.bf16.xpose.msk.msra.mxu0 %vm3458_vm7, %v2845_v60 }
 0x5c2   :  { %v2855_v30 = vpack.c.bf16 %v3008_v25, %v3007_v26 }
 0x5c3   :  { %v798_v35 = vpop.permute.xlu0 %797 }
 0x5c7   :  { %v800_v36 = vpop.permute.xlu0 %799 }
 0x5c8   :  { %2646 = vmatmul.mubr.msk.f32.vlgmr.msra.gmra.mrb[2].mxu0 %vm175_vm5, %v592_v52 }
 0x69b   :  { %v2647_v61 = vpop.f32.mrb[2].mxu0 }
 0x69c   :  { %v675_v0 = vpop.f32.mrb[3].mxu0  ;;  %v685_v1 = vmul.f32 0.25, %v2647_v61 }
 0x69d   :  { %v684_v2 = vmul.f32 0.25, %v675_v0 }
 0x69e   :  { %v687_v7 = vadd.f32 %v685_v1, %v3476_v4 }
 0x69f   :  { %v686_v5 = vadd.f32 %v684_v2, %v3469_v63 }
 0x6a0   :  { %v691_v17 = vsel %vm175_vm5, %v687_v7, -inf }
 0x6a1   :  { %v688_v6 = vsel %vm175_vm5, %v686_v5, -inf }
 0x6a2   :  { %689 = vmax.xlane.f32.xlu1 %v688_v6 }
 0x6a6   :  { %692 = vmax.xlane.f32.xlu1 %v691_v17 }
 0x72f   :  { %v690_v8 = vpop.xlane.xlu1 %689 }
 0x730   :  { %v694_v11 = vsub.f32 %v686_v5, %v690_v8 }
 0x732   :  { %v696_v15 = vmul.f32 1.442695, %v694_v11  ;;  %v1011_v11 = vld [vmem:[#allocation6] sm:$0xff] }
 0x733   :  { %v693_v13 = vpop.xlane.xlu1 %692 }
 0x734   :  { %v695_v14 = vsub.f32 %v687_v7, %v693_v13  ;;  %v1012_v13 = vld [vmem:[#allocation6 + $0x8] sm:$0xff] }
 0x736   :  { %v698_v18 = vmul.f32 1.442695, %v695_v14  ;;  %v1013_v14 = vld [vmem:[#allocation6 + $0x10] sm:$0xff] }
 0x738   :  { %3038 = vpow2.f32 %v698_v18  ;;  %v1014_v18 = vld [vmem:[#allocation6 + $0x18] sm:$0xff] }
 0x739   :  { %3040 = vpow2.f32 %v696_v15  ;;  %v2865_v15 = vpack.c.bf16 %v1012_v13, %v1011_v11  ;;  %v1248_v11 = vld [vmem:[#allocation9 + $0x8] sm:$0xff] }
 0x742   :  { %v3039_v16 = vpop.eup %3038 }
 0x743   :  { %v703_v19 = vsel %vm175_vm5, %v3039_v16, 0.0  ;;  %v3041_v20 = vpop.eup %3040 }
 0x744   :  { %704 = vadd.xlane.f32.xlu1 %v703_v19  ;;  %v700_v21 = vsel %vm175_vm5, %v3041_v20, 0.0 }
 0x748   :  { %701 = vadd.xlane.f32.xlu1 %v700_v21 }
 0x759   :  { %3000 = vrot.lane.b32.xlu1 %v3448_v55, %s3223_s27 }
 0x7d1   :  { %v705_v3 = vpop.xlane.xlu1 %704 }
 0x7d2   :  { %3042 = vrcp.f32 %v705_v3 }
 0x7d5   :  { %v702_v22 = vpop.xlane.xlu1 %701 }
 0x7d6   :  { %3044 = vrcp.f32 %v702_v22 }
 0x7d9   :  { %v3001_v24 = vpop.permute.xlu1 %3000 }
 0x7da   :  { %v3003_v27 = vunpack.i.h.bf16 %v3001_v24  ;;  %v3002_v28 = vunpack.i.l.bf16 %v3001_v24  ;;  %v1017_v24 = vsub.s32 1, %v3377_v9 }
 0x7dc   :  { %v2851_v29 = vpack.c.bf16 %v3003_v27, %v3002_v28  ;;  %v3043_v31 = vpop.eup %3042  ;;  %v1018_v25 = vrot.slane %v3443_v49, %v1017_v24 }
 0x7dd   :  { %v709_v34 = vmul.f32 %v3043_v31, %v3039_v16  ;;  %v2869_v16 = vpack.c.bf16 %v1014_v18, %v1013_v14  ;;  %v1249_v14 = vld [vmem:[#allocation9 + $0x10] sm:$0xff]  ;;  %v1251_v18 = vld [vmem:[#allocation9 + $0x20] sm:$0xff] }
 0x7de   :  { %2852 = vmatprep.subr.bf16.mxu0 %v2851_v29 }
 0x7df   :  { %2854 = vmatpush3.bf16.msra.mxu0 %v2851_v29 }
 0x7e0   :  { %v3045_v32 = vpop.eup %3044  ;;  %2857 = vmatprep.subr.msk.bf16.mxu0 %vm3458_vm7, %v2855_v30 }
 0x7e1   :  { %v708_v33 = vmul.f32 %v3045_v32, %v3041_v20 }
 0x7e3   :  { %2652 = vmatprep.mubr.msk.f32.mxu0 %vm175_vm5, %v708_v33 }
 0x7e4   :  { %2653 = vmatmul.mubr.msk.f32.vlgmr.msra.gmra.mrb[4].mxu0 %vm175_vm5, %v709_v34 }
 0x7e5   :  { %2659 = vmatprep.mubr.msk.f32.mxu0 %vm175_vm5, %v798_v35 }
 0x7e8   :  { %2860 = vmatpush3.bf16.xpose.msk.msra.mxu0 %vm3458_vm7, %v2855_v30 }
 0x7ef   :  { %2660 = vmatmul.mubr.msk.f32.vlgmr.msra.gmra.mrb[6].mxu0 %vm175_vm5, %v800_v36 }
 0x8b7   :  { %v3494_v37 = vpop.f32.mrb[4].mxu0 }
 0x8b8   :  { %v788_v38 = vpop.f32.mrb[5].mxu0 }
 0x8c2   :  { %v2661_v39 = vpop.f32.mrb[6].mxu0 }
 0x8c3   :  { %v889_v40 = vmul.f32 0.25, %v2661_v39  ;;  %v879_v41 = vpop.f32.mrb[7].mxu0 }
 0x8c4   :  { %v888_v42 = vmul.f32 0.25, %v879_v41 }
 0x8c5   :  { %v891_v43 = vadd.f32 %v889_v40, %v3476_v4 }
 0x8c6   :  { %v890_v44 = vadd.f32 %v888_v42, %v3469_v63 }
 0x8c7   :  { %v895_v45 = vsel %vm175_vm5, %v891_v43, -inf }
 0x8c8   :  { %896 = vmax.xlane.f32.xlu1 %v895_v45  ;;  %v892_v46 = vsel %vm175_vm5, %v890_v44, -inf  ;;  %v1142_v45 = vld [vmem:[#allocation7 + $0x10] sm:$0xff] }
 0x8c9   :  { %893 = vmax.xlane.f32.xlu0 %v892_v46  ;;  %v1143_v46 = vld [vmem:[#allocation7 + $0x18] sm:$0xff] }
 0x8d9   :  { %3010 = vrot.lane.b32.xlu1 %v3448_v55, %s3224_s29 }
 0x955   :  { %v897_v50 = vpop.xlane.xlu1 %896 }
 0x956   :  { %v899_v51 = vsub.f32 %v891_v43, %v897_v50  ;;  %v894_v52 = vpop.xlane.xlu0 %893  ;;  %v1141_v43 = vld [vmem:[#allocation7 + $0x8] sm:$0xff]  ;;  %v2877_v50 = vpack.c.bf16 %v1143_v46, %v1142_v45  ;;  %v1257_v46 = vsub.s32 3, %v3377_v9 }
 0x957   :  { %v898_v53 = vsub.f32 %v890_v44, %v894_v52 }
 0x958   :  { %v902_v54 = vmul.f32 1.442695, %v899_v51 }
 0x959   :  { %v900_v56 = vmul.f32 1.442695, %v898_v53  ;;  %v3011_v57 = vpop.permute.xlu1 %3010 }
 0x95a   :  { %v3013_v58 = vunpack.i.h.bf16 %v3011_v57  ;;  %v3012_v60 = vunpack.i.l.bf16 %v3011_v57 }
 0x95b   :  { %3046 = vpow2.f32 %v900_v56 }
 0x95c   :  { %v2861_v61 = vpack.c.bf16 %v3013_v58, %v3012_v60  ;;  %3048 = vpow2.f32 %v902_v54  ;;  %v1130_v58 = vsub.s32 4, %v3377_v9  ;;  %v1136_v60 = vsub.s32 5, %v3377_v9 }
 0x95e   :  { %2862 = vmatprep.subr.bf16.mxu0 %v2861_v61 }
 0x95f   :  { %2864 = vmatpush3.bf16.msra.mxu0 %v2861_v61  ;;  %v1131_v61 = vrot.slane %v3443_v49, %v1130_v58 }
 0x960   :  { %2866 = vmatprep.subr.bf16.mxu0 %v2865_v15 }
 0x965   :  { %v3047_v62 = vpop.eup %3046 }
 0x966   :  { %v904_v0 = vsel %vm175_vm5, %v3047_v62, 0.0  ;;  %v3049_v1 = vpop.eup %3048 }
 0x967   :  { %905 = vadd.xlane.f32.xlu0 %v904_v0  ;;  %v907_v55 = vsel %vm175_vm5, %v3049_v1, 0.0 }
 0x96b   :  { %908 = vadd.xlane.f32.xlu0 %v907_v55 }
 0x9f4   :  { %v906_v2 = vpop.xlane.xlu0 %905 }
 0x9f5   :  { %3050 = vrcp.f32 %v906_v2  ;;  %v1137_v2 = vrot.slane %v3443_v49, %v1136_v60 }
 0x9f8   :  { %v909_v5 = vpop.xlane.xlu0 %908 }
 0x9f9   :  { %3052 = vrcp.f32 %v909_v5 }
 0x9ff   :  { %v3051_v6 = vpop.eup %3050 }
 0xa00   :  { %v912_v7 = vmul.f32 %v3051_v6, %v3047_v62 }
 0xa02   :  { %2666 = vmatprep.mubr.msk.f32.mxu0 %vm175_vm5, %v912_v7 }
 0xa03   :  { %v3053_v17 = vpop.eup %3052 }
 0xa04   :  { %v913_v8 = vmul.f32 %v3053_v17, %v3049_v1 }
 0xa06   :  { %2667 = vmatmul.mubr.msk.f32.vlgmr.msra.gmra.mrb[8].mxu0 %vm175_vm5, %v913_v8  ;;  %v1247_v8 = vld [vmem:[#allocation9] sm:$0xff] }
 0xa07   :  { %2868 = vmatpush3.bf16.msra.mxu0 %v2865_v15  ;;  %v2881_v13 = vpack.c.bf16 %v1248_v11, %v1247_v8  ;;  %v1250_v15 = vld [vmem:[#allocation9 + $0x18] sm:$0xff] }
 0xa08   :  { %2870 = vmatprep.subr.bf16.mxu0 %v2869_v16 }
 0xa0b   :  { %2872 = vmatpush3.bf16.msra.mxu0 %v2869_v16  ;;  %v2885_v16 = vpack.c.bf16 %v1250_v15, %v1249_v14  ;;  %v1385_v14 = vld [vmem:[#allocation4 + $0x28] sm:$0xff] }
 0xa0c   :  { %2882 = vmatprep.subr.bf16.mxu0 %v2881_v13 }
 0xad9   :  { %v2668_v19 = vpop.f32.mrb[8].mxu0 }
 0xada   :  { %1005 = vrot.lane.b32.xlu1 %v2668_v19, %s3225_s3  ;;  %v992_v20 = vpop.f32.mrb[9].mxu0  ;;  %v1252_v19 = vld [vmem:[#allocation9 + $0x28] sm:$0xff] }
 0xadb   :  { %1003 = vrot.lane.b32.xlu0 %v992_v20, %s3225_s3  ;;  %v2889_v20 = vpack.c.bf16 %v1252_v19, %v1251_v18  ;;  %v1386_v18 = vld [vmem:[#allocation4 + $0x30] sm:$0xff] }
 0xb4c   :  { %v1006_v21 = vpop.permute.xlu1 %1005 }
 0xb4d   :  { %v1004_v3 = vpop.permute.xlu0 %1003  ;;  %v1010_v23 = vsel %vm175_vm5, %v3494_v37, %v1006_v21  ;;  %v1253_v21 = vld [vmem:[#allocation9 + $0x30] sm:$0xff] }
 0xb4e   :  { %v1009_v22 = vsel %vm175_vm5, %v788_v38, %v1004_v3  ;;  %v1254_v3 = vld [vmem:[#allocation9 + $0x38] sm:$0xff] }
 0xb4f   :  { %2677 = vmatprep.mubr.msk.f32.mxu0 %vm453_vm6, %v1009_v22  ;;  %v2893_v22 = vpack.c.bf16 %v1254_v3, %v1253_v21 }
 0xb50   :  { %2678 = vmatmul.mubr.msk.f32.vlgmr.msra.gmra.mrb[10].mxu0 %vm453_vm6, %v1010_v23  ;;  %v1146_v23 = vsub.s32 2, %v3377_v9 }
 0xb51   :  { %2884 = vmatpush3.bf16.msra.mxu0 %v2881_v13 }
 0xb52   :  { %2886 = vmatprep.subr.bf16.mxu0 %v2885_v16 }
 0xb55   :  { %2888 = vmatpush3.bf16.msra.mxu0 %v2885_v16  ;;  %v1387_v16 = vld [vmem:[#allocation4 + $0x38] sm:$0xff] }
 0xb56   :  { %2890 = vmatprep.subr.bf16.mxu0 %v2889_v20  ;;  %v2901_v19 = vpack.c.bf16 %v1387_v16, %v1386_v18 }
 0xb59   :  { %2892 = vmatpush3.bf16.msra.mxu0 %v2889_v20 }
 0xb5a   :  { %2894 = vmatprep.subr.bf16.mxu0 %v2893_v22 }
 0xb5d   :  { %2896 = vmatpush3.bf16.msra.mxu0 %v2893_v22 }
 0xc23   :  { %v2679_v26 = vpop.f32.mrb[10].mxu0 }
 0xc24   :  { %v1097_v27 = vadd.f32 %v2679_v26, %v1018_v25  ;;  %v1091_v28 = vpop.f32.mrb[11].mxu0 }
 0xc25   :  { %v1092_v29 = vadd.f32 %v1091_v28, %v1018_v25  ;;  %v1147_v25 = vrot.slane %v3443_v49, %v1146_v23 }
 0xc26   :  { %v1101_v30 = vadd.f32 %v1097_v27, %v3434_v48 }
 0xc27   :  { %v1100_v31 = vadd.f32 %v1092_v29, %v3432_v47  ;;  %v1140_v47 = vld [vmem:[#allocation7] sm:$0xff] }
 0xc28   :  { %v1105_v32 = vsel %vm453_vm6, %v1101_v30, 0.0  ;;  %v2873_v44 = vpack.c.bf16 %v1141_v43, %v1140_v47 }
 0xc29   :  { %1106 = vadd.xlane.f32.xlu0 %v1105_v32  ;;  %v1102_v33 = vsel %vm453_vm6, %v1100_v31, 0.0 }
 0xc2a   :  { %1103 = vadd.xlane.f32.xlu1 %v1102_v33  ;;  %2874 = vmatprep.subr.bf16.mxu1 %v2873_v44 }
 0xc2b   :  { %2876 = vmatpush3.bf16.msra.mxu1 %v2873_v44 }
 0xc2c   :  { %2878 = vmatprep.subr.bf16.mxu1 %v2877_v50 }
 0xc2f   :  { %2880 = vmatpush3.bf16.msra.mxu1 %v2877_v50  ;;  %v1258_v50 = vrot.slane %v3443_v49, %v1257_v46 }
 0xcb6   :  { %v1107_v34 = vpop.xlane.xlu0 %1106 }
 0xcb7   :  { %v1109_v35 = vmul.f32 0.03125, %v1107_v34  ;;  %v1104_v36 = vpop.xlane.xlu1 %1103 }
 0xcb8   :  { %v1108_v37 = vmul.f32 0.03125, %v1104_v36 }
 0xcb9   :  { %v1111_v38 = vsub.f32 %v1101_v30, %v1109_v35 }
 0xcba   :  { %v1110_v39 = vsub.f32 %v1100_v31, %v1108_v37 }
 0xcbb   :  { %v1113_v40 = vmul.f32 %v1111_v38, %v1111_v38 }
 0xcbc   :  { %v1112_v41 = vmul.f32 %v1110_v39, %v1110_v39 }
 0xcbd   :  { %v1117_v42 = vsel %vm453_vm6, %v1113_v40, 0.0 }
 0xcbe   :  { %1118 = vadd.xlane.f32.xlu1 %v1117_v42  ;;  %v1114_v48 = vsel %vm453_vm6, %v1112_v41, 0.0 }
 0xcbf   :  { %1115 = vadd.xlane.f32.xlu0 %v1114_v48 }
 0xd4b   :  { %v1119_v51 = vpop.xlane.xlu1 %1118 }
 0xd4c   :  { %v1121_v52 = vmul.f32 0.03125, %v1119_v51  ;;  %v1116_v53 = vpop.xlane.xlu0 %1115 }
 0xd4d   :  { %v1120_v54 = vmul.f32 0.03125, %v1116_v53 }
 0xd4e   :  { %v1123_v56 = vadd.f32 1e-05, %v1121_v52 }
 0xd4f   :  { %v1122_v57 = vadd.f32 1e-05, %v1120_v54 }
 0xd50   :  { %3054 = vrsqrt.f32 %v1123_v56 }
 0xd51   :  { %3056 = vrsqrt.f32 %v1122_v57 }
 0xd5a   :  { %v3055_v62 = vpop.eup %3054 }
 0xd5b   :  { %v3057_v0 = vpop.eup %3056  ;;  %v1127_v1 = vmul.f32 %v3055_v62, %v1111_v38 }
 0xd5c   :  { %v1126_v55 = vmul.f32 %v3057_v0, %v1110_v39 }
 0xd5d   :  { %v1133_v5 = vmul.f32 %v1131_v61, %v1127_v1 }
 0xd5e   :  { %v1132_v6 = vmul.f32 %v1131_v61, %v1126_v55 }
 0xd5f   :  { %v1139_v17 = vadd.f32 %v1137_v2, %v1133_v5 }
 0xd60   :  { %v1138_v7 = vadd.f32 %v1137_v2, %v1132_v6 }
 0xd62   :  { %2688 = vmatprep.mubr.msk.f32.mxu1 %vm453_vm6, %v1138_v7 }
 0xd63   :  { %2689 = vmatmul.mubr.msk.f32.vlgmr.msra.gmra.mrb[4].mxu1 %vm453_vm6, %v1139_v17 }
 0xe36   :  { %v2690_v26 = vpop.f32.mrb[4].mxu1 }
 0xe37   :  { %v1226_v27 = vadd.f32 %v2690_v26, %v1147_v25  ;;  %v1220_v28 = vpop.f32.mrb[5].mxu1 }
 0xe38   :  { %v1221_v29 = vadd.f32 %v1220_v28, %v1147_v25  ;;  %v1377_v28 = vsub.s32 7, %v3377_v9 }
 0xe39   :  { %v1232_v30 = vmul.f32 0.044715, %v1226_v27  ;;  %v1230_v43 = vmul.f32 0.5, %v1226_v27 }
 0xe3a   :  { %v1231_v31 = vmul.f32 0.044715, %v1221_v29  ;;  %v1229_v48 = vmul.f32 0.5, %v1221_v29 }
 0xe3b   :  { %v1234_v32 = vmul.f32 %v1232_v30, %v1226_v27 }
 0xe3c   :  { %v1233_v33 = vmul.f32 %v1231_v31, %v1221_v29 }
 0xe3d   :  { %v1236_v34 = vmul.f32 %v1234_v32, %v1226_v27 }
 0xe3e   :  { %v1235_v35 = vmul.f32 %v1233_v33, %v1221_v29 }
 0xe3f   :  { %v1238_v36 = vadd.f32 %v1236_v34, %v1226_v27  ;;  %v1371_v27 = vsub.s32 6, %v3377_v9  ;;  %v1378_v34 = vrot.slane %v3443_v49, %v1377_v28 }
 0xe40   :  { %v1237_v37 = vadd.f32 %v1235_v35, %v1221_v29 }
 0xe41   :  { %v1240_v38 = vmul.f32 0.7978846, %v1238_v36  ;;  %v1372_v29 = vrot.slane %v3443_v49, %v1371_v27 }
 0xe42   :  { %v1239_v39 = vmul.f32 0.7978846, %v1237_v37 }
 0xe43   :  { %3058 = vtanh.f32 %v1240_v38 }
 0xe44   :  { %3060 = vtanh.f32 %v1239_v39  ;;  %v3566_v39 = vld [vmem:[%s3668_s7 + $0x8] sm:$0xff] }
 0xe45   :  { %v1391_v49 = vrot.slane %v3566_v39, %v3385_v12 }
 0xe4d   :  { %v3059_v40 = vpop.eup %3058 }
 0xe4e   :  { %v3061_v41 = vpop.eup %3060  ;;  %v1244_v42 = vadd.f32 1.0, %v3059_v40 }
 0xe4f   :  { %v1243_v47 = vadd.f32 1.0, %v3061_v41 }
 0xe50   :  { %v1246_v45 = vmul.f32 %v1244_v42, %v1230_v43 }
 0xe51   :  { %v1245_v44 = vmul.f32 %v1243_v47, %v1229_v48 }
 0xe53   :  { %2707 = vmatprep.mubr.msk.f32.mxu0 %vm1259_vm8, %v1245_v44 }
 0xe54   :  { %2708 = vmatmul.mubr.msk.f32.vlgmr.msra.gmra.mrb[12].mxu0 %vm1259_vm8, %v1246_v45 }
 0xf27   :  { %v2709_v51 = vpop.f32.mrb[12].mxu0 }
 0xf28   :  { %v1338_v52 = vadd.f32 %v2709_v51, %v1258_v50  ;;  %v1332_v53 = vpop.f32.mrb[13].mxu0 }
 0xf29   :  { %v1333_v54 = vadd.f32 %v1332_v53, %v1258_v50 }
 0xf2a   :  { %v1342_v56 = vadd.f32 %v1338_v52, %v1139_v17 }
 0xf2b   :  { %v1341_v57 = vadd.f32 %v1333_v54, %v1138_v7  ;;  %v1384_v7 = vld [vmem:[#allocation4 + $0x20] sm:$0xff] }
 0xf2c   :  { %v1346_v61 = vsel %vm453_vm6, %v1342_v56, 0.0  ;;  %v2897_v15 = vpack.c.bf16 %v1385_v14, %v1384_v7 }
 0xf2d   :  { %1347 = vadd.xlane.f32.xlu1 %v1346_v61  ;;  %v1343_v62 = vsel %vm453_vm6, %v1341_v57, 0.0 }
 0xf2e   :  { %1344 = vadd.xlane.f32.xlu0 %v1343_v62  ;;  %2898 = vmatprep.subr.bf16.mxu1 %v2897_v15 }
 0xf2f   :  { %2900 = vmatpush3.bf16.msra.mxu1 %v2897_v15 }
 0xf30   :  { %2902 = vmatprep.subr.bf16.mxu1 %v2901_v19 }
 0xf33   :  { %2904 = vmatpush3.bf16.msra.mxu1 %v2901_v19 }
 0xfba   :  { %v1348_v0 = vpop.xlane.xlu1 %1347 }
 0xfbb   :  { %v1350_v1 = vmul.f32 0.03125, %v1348_v0  ;;  %v1345_v55 = vpop.xlane.xlu0 %1344 }
 0xfbc   :  { %v1349_v2 = vmul.f32 0.03125, %v1345_v55 }
 0xfbd   :  { %v1352_v5 = vsub.f32 %v1342_v56, %v1350_v1 }
 0xfbe   :  { %v1351_v6 = vsub.f32 %v1341_v57, %v1349_v2 }
 0xfbf   :  { %v1354_v8 = vmul.f32 %v1352_v5, %v1352_v5 }
 0xfc0   :  { %v1353_v11 = vmul.f32 %v1351_v6, %v1351_v6 }
 0xfc1   :  { %v1358_v13 = vsel %vm453_vm6, %v1354_v8, 0.0 }
 0xfc2   :  { %1359 = vadd.xlane.f32.xlu1 %v1358_v13  ;;  %v1355_v17 = vsel %vm453_vm6, %v1353_v11, 0.0 }
 0xfc3   :  { %1356 = vadd.xlane.f32.xlu0 %v1355_v17 }
0x104f   :  { %v1360_v20 = vpop.xlane.xlu1 %1359 }
0x1050   :  { %v1362_v21 = vmul.f32 0.03125, %v1360_v20  ;;  %v1357_v3 = vpop.xlane.xlu0 %1356 }
0x1051   :  { %v1361_v22 = vmul.f32 0.03125, %v1357_v3 }
0x1052   :  { %v1364_v25 = vadd.f32 1e-05, %v1362_v21 }
0x1053   :  { %v1363_v26 = vadd.f32 1e-05, %v1361_v22 }
0x1054   :  { %3062 = vrsqrt.f32 %v1364_v25 }
0x1055   :  { %3064 = vrsqrt.f32 %v1363_v26 }
0x105e   :  { %v3063_v30 = vpop.eup %3062 }
0x105f   :  { %v3065_v31 = vpop.eup %3064  ;;  %v1368_v32 = vmul.f32 %v3063_v30, %v1352_v5 }
0x1060   :  { %v1367_v33 = vmul.f32 %v3065_v31, %v1351_v6 }
0x1061   :  { %v1374_v35 = vmul.f32 %v1372_v29, %v1368_v32 }
0x1062   :  { %v1373_v36 = vmul.f32 %v1372_v29, %v1367_v33 }
0x1063   :  { %v3557_v38 = vadd.f32 %v1378_v34, %v1374_v35 }
0x1064   :  { %v3555_v37 = vadd.f32 %v1378_v34, %v1373_v36 }
0x1066   :  { %2718 = vmatprep.mubr.msk.f32.mxu1 %vm453_vm6, %v3555_v37 }
0x1067   :  { %2719 = vmatmul.mubr.msk.f32.vlgmr.msra.gmra.mrb[6].mxu1 %vm453_vm6, %v3557_v38 }
0x113a   :  { %v2720_v40 = vpop.f32.mrb[6].mxu1 }
0x113b   :  { %v1470_v41 = vadd.f32 %v2720_v40, %v1391_v49  ;;  %v1464_v42 = vpop.f32.mrb[7].mxu1 }
0x113c   :  { %v1465_v48 = vadd.f32 %v1464_v42, %v1391_v49 }
0x113e   :  { %2725 = vmatprep.mubr.msk.f32.mxu1 %vm175_vm5, %v1465_v48  ;;  %v3571_v47 = vpack.i.bf16 %v1470_v41, %v1465_v48 }
0x1140   :  { %3020 = vrot.lane.b32.xlu1 %v3571_v47, %s3220_s25  ;;  %3015 = vrot.lane.b32.xlu0 %v3571_v47, %s3219_s18 }
0x1144   :  { %1675 = vrot.lane.b32.xlu1 %v1465_v48, %s3221_s26  ;;  %1677 = vrot.lane.b32.xlu0 %v1470_v41, %s3221_s26 }
0x11b2   :  { %v3021_v43 = vpop.permute.xlu1 %3020  ;;  %v3016_v12 = vpop.permute.xlu0 %3015 }
0x11b3   :  { %v3023_v44 = vunpack.i.h.bf16 %v3021_v43  ;;  %v3022_v45 = vunpack.i.l.bf16 %v3021_v43  ;;  %v3018_v50 = vunpack.i.h.bf16 %v3016_v12  ;;  %v3017_v51 = vunpack.i.l.bf16 %v3016_v12 }
0x11b5   :  { %v2905_v52 = vpack.c.bf16 %v3018_v50, %v3017_v51  ;;  %v2915_v53 = vpack.c.bf16 %v3023_v44, %v3022_v45 }
0x11b6   :  { %v1676_v54 = vpop.permute.xlu1 %1675  ;;  %v1678_v56 = vpop.permute.xlu0 %1677 }
0x11b7   :  { %2907 = vmatprep.subr.msk.bf16.mxu1 %vm3458_vm7, %v2905_v52 }
0x11b8   :  { %2910 = vmatpush3.bf16.xpose.msk.msra.mxu1 %vm3458_vm7, %v2905_v52 }
0x11b9   :  { %2917 = vmatprep.subr.msk.bf16.mxu1 %vm3458_vm7, %v2915_v53 }
0x11bf   :  { %2726 = vmatmul.mubr.msk.f32.vlgmr.msra.gmra.mrb[8].mxu1 %vm175_vm5, %v1470_v41 }
0x11c0   :  { %2920 = vmatpush3.bf16.xpose.msk.msra.mxu1 %vm3458_vm7, %v2915_v53  ;;  %2739 = vmatprep.mubr.msk.f32.mxu1 %vm175_vm5, %v1676_v54 }
0x11c7   :  { %2740 = vmatmul.mubr.msk.f32.vlgmr.msra.gmra.mrb[10].mxu1 %vm175_vm5, %v1678_v56 }
0x1292   :  { %v2727_v57 = vpop.f32.mrb[8].mxu1 }
0x1293   :  { %v1563_v61 = vmul.f32 0.25, %v2727_v57  ;;  %v1553_v62 = vpop.f32.mrb[9].mxu1 }
0x1294   :  { %v1562_v0 = vmul.f32 0.25, %v1553_v62 }
0x1295   :  { %v1565_v1 = vadd.f32 %v1563_v61, %v3476_v4 }
0x1296   :  { %v1564_v55 = vadd.f32 %v1562_v0, %v3469_v63 }
0x1297   :  { %v1569_v2 = vsel %vm175_vm5, %v1565_v1, -inf }
0x1298   :  { %1570 = vmax.xlane.f32.xlu0 %v1569_v2  ;;  %v1566_v5 = vsel %vm175_vm5, %v1564_v55, -inf  ;;  %v1892_v2 = vld [vmem:[#allocation6 + $0x30] sm:$0xff] }
0x1299   :  { %1567 = vmax.xlane.f32.xlu1 %v1566_v5 }
0x129a   :  { %v2741_v59 = vpop.f32.mrb[10].mxu1 }
0x129b   :  { %v1767_v6 = vmul.f32 0.25, %v2741_v59  ;;  %v1757_v8 = vpop.f32.mrb[11].mxu1  ;;  %v1893_v59 = vld [vmem:[#allocation6 + $0x38] sm:$0xff] }
0x129c   :  { %v1766_v11 = vmul.f32 0.25, %v1757_v8 }
0x129d   :  { %v1769_v13 = vadd.f32 %v1767_v6, %v3476_v4  ;;  %v2929_v6 = vpack.c.bf16 %v1893_v59, %v1892_v2  ;;  %v2132_v59 = vld [vmem:[#allocation9 + $0x60] sm:$0xff] }
0x129e   :  { %v1768_v17 = vadd.f32 %v1766_v11, %v3469_v63 }
0x129f   :  { %v1773_v7 = vsel %vm175_vm5, %v1769_v13, -inf }
0x12a0   :  { %1774 = vmax.xlane.f32.xlu1 %v1773_v7  ;;  %v1770_v14 = vsel %vm175_vm5, %v1768_v17, -inf }
0x12a1   :  { %1771 = vmax.xlane.f32.xlu0 %v1770_v14 }
0x1325   :  { %v1571_v15 = vpop.xlane.xlu0 %1570 }
0x1326   :  { %v1573_v18 = vsub.f32 %v1565_v1, %v1571_v15  ;;  %v1568_v16 = vpop.xlane.xlu1 %1567  ;;  %v1890_v1 = vld [vmem:[#allocation6 + $0x20] sm:$0xff] }
0x1327   :  { %v1572_v19 = vsub.f32 %v1564_v55, %v1568_v16  ;;  %v1891_v55 = vld [vmem:[#allocation6 + $0x28] sm:$0xff]  ;;  %v1897_v16 = vrot.slane %v3566_v39, %v1017_v24 }
0x1328   :  { %v1576_v20 = vmul.f32 1.442695, %v1573_v18  ;;  %v2925_v5 = vpack.c.bf16 %v1891_v55, %v1890_v1  ;;  %v2128_v1 = vld [vmem:[#allocation9 + $0x40] sm:$0xff]  ;;  %v2129_v55 = vld [vmem:[#allocation9 + $0x48] sm:$0xff] }
0x1329   :  { %v1574_v21 = vmul.f32 1.442695, %v1572_v19  ;;  %v2941_v2 = vpack.c.bf16 %v2129_v55, %v2128_v1 }
0x132a   :  { %3066 = vpow2.f32 %v1576_v20 }
0x132b   :  { %3068 = vpow2.f32 %v1574_v21 }
0x132d   :  { %v1775_v3 = vpop.xlane.xlu1 %1774 }
0x132e   :  { %v1777_v22 = vsub.f32 %v1769_v13, %v1775_v3  ;;  %v1772_v25 = vpop.xlane.xlu0 %1771 }
0x132f   :  { %v1776_v4 = vsub.f32 %v1768_v17, %v1772_v25 }
0x1330   :  { %v1780_v26 = vmul.f32 1.442695, %v1777_v22 }
0x1331   :  { %v1778_v63 = vmul.f32 1.442695, %v1776_v4 }
0x1332   :  { %3070 = vpow2.f32 %v1780_v26 }
0x1333   :  { %3072 = vpow2.f32 %v1778_v63 }
0x1334   :  { %v3067_v29 = vpop.eup %3066 }
0x1335   :  { %v3069_v30 = vpop.eup %3068  ;;  %v1581_v31 = vsel %vm175_vm5, %v3067_v29, 0.0 }
0x1336   :  { %1582 = vadd.xlane.f32.xlu1 %v1581_v31  ;;  %v1578_v32 = vsel %vm175_vm5, %v3069_v30, 0.0 }
0x1337   :  { %1579 = vadd.xlane.f32.xlu0 %v1578_v32 }
0x133c   :  { %v3071_v33 = vpop.eup %3070 }
0x133d   :  { %v3073_v34 = vpop.eup %3072  ;;  %v1785_v35 = vsel %vm175_vm5, %v3071_v33, 0.0 }
0x133e   :  { %1786 = vadd.xlane.f32.xlu1 %v1785_v35  ;;  %v1782_v36 = vsel %vm175_vm5, %v3073_v34, 0.0 }
0x133f   :  { %1783 = vadd.xlane.f32.xlu0 %v1782_v36  ;;  %v2021_v36 = vld [vmem:[#allocation7 + $0x28] sm:$0xff] }
0x134f   :  { %3030 = vrot.lane.b32.xlu1 %v3571_v47, %s3224_s29 }
0x1355   :  { %3025 = vrot.lane.b32.xlu0 %v3571_v47, %s3223_s27 }
0x13c3   :  { %v1583_v40 = vpop.xlane.xlu1 %1582 }
0x13c4   :  { %v1580_v49 = vpop.xlane.xlu0 %1579 }
0x13c5   :  { %3074 = vrcp.f32 %v1580_v49 }
0x13c6   :  { %3076 = vrcp.f32 %v1583_v40  ;;  %v2022_v40 = vld [vmem:[#allocation7 + $0x30] sm:$0xff] }
0x13cb   :  { %v1787_v41 = vpop.xlane.xlu1 %1786 }
0x13cc   :  { %v1784_v42 = vpop.xlane.xlu0 %1783 }
0x13cd   :  { %3078 = vrcp.f32 %v1784_v42 }
0x13ce   :  { %3080 = vrcp.f32 %v1787_v41  ;;  %v2023_v41 = vld [vmem:[#allocation7 + $0x38] sm:$0xff] }
0x13cf   :  { %v3075_v48 = vpop.eup %3074  ;;  %v3031_v43 = vpop.permute.xlu1 %3030  ;;  %v2937_v42 = vpack.c.bf16 %v2023_v41, %v2022_v40 }
0x13d0   :  { %v3026_v12 = vpop.permute.xlu0 %3025  ;;  %v1586_v44 = vmul.f32 %v3075_v48, %v3069_v30  ;;  %v3033_v45 = vunpack.i.h.bf16 %v3031_v43  ;;  %v3032_v50 = vunpack.i.l.bf16 %v3031_v43  ;;  %v3077_v47 = vpop.eup %3076 }
0x13d1   :  { %v3028_v51 = vunpack.i.h.bf16 %v3026_v12  ;;  %v3027_v52 = vunpack.i.l.bf16 %v3026_v12  ;;  %v1587_v57 = vmul.f32 %v3077_v47, %v3067_v29 }
0x13d2   :  { %2732 = vmatprep.mubr.msk.f32.mxu0 %vm175_vm5, %v1586_v44  ;;  %v2921_v54 = vpack.c.bf16 %v3033_v45, %v3032_v50 }
0x13d3   :  { %v2911_v53 = vpack.c.bf16 %v3028_v51, %v3027_v52  ;;  %v2010_v51 = vrot.slane %v3566_v39, %v1130_v58  ;;  %v2130_v58 = vld [vmem:[#allocation9 + $0x50] sm:$0xff] }
0x13d5   :  { %2912 = vmatprep.subr.bf16.mxu0 %v2911_v53 }
0x13d6   :  { %2914 = vmatpush3.bf16.msra.mxu0 %v2911_v53 }
0x13d7   :  { %v3079_v56 = vpop.eup %3078  ;;  %2922 = vmatprep.subr.bf16.mxu0 %v2921_v54 }
0x13d8   :  { %v3081_v61 = vpop.eup %3080  ;;  %v1790_v62 = vmul.f32 %v3079_v56, %v3073_v34  ;;  %v2016_v56 = vrot.slane %v3566_v39, %v1136_v60 }
0x13d9   :  { %2733 = vmatmul.mubr.msk.f32.vlgmr.msra.gmra.mrb[14].mxu0 %vm175_vm5, %v1587_v57  ;;  %v1791_v0 = vmul.f32 %v3081_v61, %v3071_v33 }
0x13da   :  { %2924 = vmatpush3.bf16.msra.mxu0 %v2921_v54  ;;  %2746 = vmatprep.mubr.msk.f32.mxu0 %vm175_vm5, %v1790_v62 }
0x13db   :  { %2926 = vmatprep.subr.bf16.mxu0 %v2925_v5 }
0x13dd   :  { %2747 = vmatmul.mubr.msk.f32.vlgmr.msra.gmra.mrb[16].mxu0 %vm175_vm5, %v1791_v0 }
0x13de   :  { %2928 = vmatpush3.bf16.msra.mxu0 %v2925_v5  ;;  %v2131_v5 = vld [vmem:[#allocation9 + $0x58] sm:$0xff] }
0x13df   :  { %2930 = vmatprep.subr.bf16.mxu0 %v2929_v6 }
0x13e2   :  { %2932 = vmatpush3.bf16.msra.mxu0 %v2929_v6  ;;  %v2945_v6 = vpack.c.bf16 %v2131_v5, %v2130_v58 }
0x13e3   :  { %2942 = vmatprep.subr.bf16.mxu0 %v2941_v2 }
0x14ac   :  { %v2734_v8 = vpop.f32.mrb[14].mxu0 }
0x14ad   :  { %v1666_v11 = vpop.f32.mrb[15].mxu0 }
0x14b0   :  { %v2748_v13 = vpop.f32.mrb[16].mxu0 }
0x14b1   :  { %1883 = vrot.lane.b32.xlu0 %v2748_v13, %s3225_s3  ;;  %v1870_v17 = vpop.f32.mrb[17].mxu0  ;;  %v2135_v13 = vld [vmem:[#allocation9 + $0x78] sm:$0xff] }
0x14b2   :  { %1881 = vrot.lane.b32.xlu1 %v1870_v17, %s3225_s3 }
0x1523   :  { %v1884_v7 = vpop.permute.xlu0 %1883 }
0x1524   :  { %v1882_v14 = vpop.permute.xlu1 %1881  ;;  %v1888_v18 = vsel %vm175_vm5, %v2734_v8, %v1884_v7  ;;  %v2133_v8 = vld [vmem:[#allocation9 + $0x68] sm:$0xff]  ;;  %v2027_v7 = vrot.slane %v3566_v39, %v1146_v23 }
0x1525   :  { %v1887_v15 = vsel %vm175_vm5, %v1666_v11, %v1882_v14  ;;  %v2949_v60 = vpack.c.bf16 %v2133_v8, %v2132_v59  ;;  %v2134_v11 = vld [vmem:[#allocation9 + $0x70] sm:$0xff]  ;;  %v2252_v8 = vrot.slane %v3566_v39, %v1371_v27  ;;  %vm2351_vm5 = vcmask 23552  }
0x1526   :  { %2757 = vmatprep.mubr.msk.f32.mxu0 %vm453_vm6, %v1887_v15  ;;  %v2953_v17 = vpack.c.bf16 %v2135_v13, %v2134_v11 }
0x1527   :  { %2758 = vmatmul.mubr.msk.f32.vlgmr.msra.gmra.mrb[18].mxu0 %vm453_vm6, %v1888_v18 }
0x1528   :  { %2944 = vmatpush3.bf16.msra.mxu0 %v2941_v2 }
0x1529   :  { %2946 = vmatprep.subr.bf16.mxu0 %v2945_v6 }
0x152c   :  { %2948 = vmatpush3.bf16.msra.mxu0 %v2945_v6 }
0x152d   :  { %2950 = vmatprep.subr.bf16.mxu0 %v2949_v60 }
0x1530   :  { %2952 = vmatpush3.bf16.msra.mxu0 %v2949_v60 }
0x1531   :  { %2954 = vmatprep.subr.bf16.mxu0 %v2953_v17 }
0x1534   :  { %2956 = vmatpush3.bf16.msra.mxu0 %v2953_v17 }
0x15fa   :  { %v2759_v19 = vpop.f32.mrb[18].mxu0 }
0x15fb   :  { %v1976_v20 = vadd.f32 %v2759_v19, %v1897_v16  ;;  %v1970_v21 = vpop.f32.mrb[19].mxu0 }
0x15fc   :  { %v1971_v3 = vadd.f32 %v1970_v21, %v1897_v16 }
0x15fd   :  { %v1980_v22 = vadd.f32 %v1976_v20, %v3557_v38 }
0x15fe   :  { %v1979_v25 = vadd.f32 %v1971_v3, %v3555_v37  ;;  %v2020_v37 = vld [vmem:[#allocation7 + $0x20] sm:$0xff] }
0x15ff   :  { %v1984_v4 = vsel %vm453_vm6, %v1980_v22, 0.0  ;;  %v2933_v49 = vpack.c.bf16 %v2021_v36, %v2020_v37 }
0x1600   :  { %1985 = vadd.xlane.f32.xlu0 %v1984_v4  ;;  %v1981_v26 = vsel %vm453_vm6, %v1979_v25, 0.0 }
0x1601   :  { %1982 = vadd.xlane.f32.xlu1 %v1981_v26  ;;  %2934 = vmatprep.subr.bf16.mxu1 %v2933_v49 }
0x1602   :  { %2936 = vmatpush3.bf16.msra.mxu1 %v2933_v49 }
0x1603   :  { %2938 = vmatprep.subr.bf16.mxu1 %v2937_v42 }
0x1606   :  { %2940 = vmatpush3.bf16.msra.mxu1 %v2937_v42 }
0x168d   :  { %v1986_v63 = vpop.xlane.xlu0 %1985 }
0x168e   :  { %v1988_v29 = vmul.f32 0.03125, %v1986_v63  ;;  %v1983_v30 = vpop.xlane.xlu1 %1982 }
0x168f   :  { %v1987_v31 = vmul.f32 0.03125, %v1983_v30 }
0x1690   :  { %v1990_v32 = vsub.f32 %v1980_v22, %v1988_v29 }
0x1691   :  { %v1989_v24 = vsub.f32 %v1979_v25, %v1987_v31 }
0x1692   :  { %v1992_v33 = vmul.f32 %v1990_v32, %v1990_v32 }
0x1693   :  { %v1991_v34 = vmul.f32 %v1989_v24, %v1989_v24 }
0x1694   :  { %v1996_v35 = vsel %vm453_vm6, %v1992_v33, 0.0 }
0x1695   :  { %1997 = vadd.xlane.f32.xlu1 %v1996_v35  ;;  %v1993_v38 = vsel %vm453_vm6, %v1991_v34, 0.0 }
0x1696   :  { %1994 = vadd.xlane.f32.xlu0 %v1993_v38  ;;  %v2139_v38 = vrot.slane %v3566_v39, %v1257_v46 }
0x1722   :  { %v1998_v48 = vpop.xlane.xlu1 %1997 }
0x1723   :  { %v2000_v43 = vmul.f32 0.03125, %v1998_v48  ;;  %v1995_v12 = vpop.xlane.xlu0 %1994 }
0x1724   :  { %v1999_v44 = vmul.f32 0.03125, %v1995_v12 }
0x1725   :  { %v2002_v45 = vadd.f32 1e-05, %v2000_v43 }
0x1726   :  { %v2001_v50 = vadd.f32 1e-05, %v1999_v44 }
0x1727   :  { %3082 = vrsqrt.f32 %v2002_v45 }
0x1728   :  { %3084 = vrsqrt.f32 %v2001_v50 }
0x1731   :  { %v3083_v52 = vpop.eup %3082 }
0x1732   :  { %v3085_v53 = vpop.eup %3084  ;;  %v2006_v47 = vmul.f32 %v3083_v52, %v1990_v32 }
0x1733   :  { %v2005_v54 = vmul.f32 %v3085_v53, %v1989_v24 }
0x1734   :  { %v2012_v57 = vmul.f32 %v2010_v51, %v2006_v47 }
0x1735   :  { %v2011_v61 = vmul.f32 %v2010_v51, %v2005_v54 }
0x1736   :  { %v2018_v0 = vadd.f32 %v2016_v56, %v2012_v57  ;;  %v2262_v57 = vld [vmem:[#allocation2 + $0xa0] sm:$0xff] }
0x1737   :  { %v2017_v62 = vadd.f32 %v2016_v56, %v2011_v61  ;;  %v2261_v56 = vld [vmem:[#allocation2 + $0x98] sm:$0xff] }
0x1738   :  { %v2957_v61 = vpack.c.bf16 %v2262_v57, %v2261_v56 }
0x1739   :  { %2768 = vmatprep.mubr.msk.f32.mxu1 %vm453_vm6, %v2017_v62 }
0x173a   :  { %2769 = vmatmul.mubr.msk.f32.vlgmr.msra.gmra.mrb[12].mxu1 %vm453_vm6, %v2018_v0  ;;  %2958 = vmatprep.subr.bf16.mxu1 %v2957_v61 }
0x173b   :  { %2960 = vmatpush3.bf16.msra.mxu1 %v2957_v61 }
0x180d   :  { %v2770_v14 = vpop.f32.mrb[12].mxu1 }
0x180e   :  { %v2106_v15 = vadd.f32 %v2770_v14, %v2027_v7  ;;  %v2100_v18 = vpop.f32.mrb[13].mxu1 }
0x180f   :  { %v2101_v16 = vadd.f32 %v2100_v18, %v2027_v7  ;;  %v2258_v7 = vrot.slane %v3566_v39, %v1377_v28 }
0x1810   :  { %v2112_v19 = vmul.f32 0.044715, %v2106_v15  ;;  %v2110_v33 = vmul.f32 0.5, %v2106_v15 }
0x1811   :  { %v2111_v20 = vmul.f32 0.044715, %v2101_v16  ;;  %v2109_v23 = vmul.f32 0.5, %v2101_v16 }
0x1812   :  { %v2114_v21 = vmul.f32 %v2112_v19, %v2106_v15  ;;  %v2458_v19 = vld [vmem:[#allocation2 + $0x93] ss:$0 sm:$0xff] }
0x1813   :  { %v2113_v3 = vmul.f32 %v2111_v20, %v2101_v16 }
0x1814   :  { %v2116_v22 = vmul.f32 %v2114_v21, %v2106_v15 }
0x1815   :  { %v2115_v25 = vmul.f32 %v2113_v3, %v2101_v16 }
0x1816   :  { %v2118_v4 = vadd.f32 %v2116_v22, %v2106_v15 }
0x1817   :  { %v2117_v26 = vadd.f32 %v2115_v25, %v2101_v16 }
0x1818   :  { %v2120_v63 = vmul.f32 0.7978846, %v2118_v4 }
0x1819   :  { %v2119_v29 = vmul.f32 0.7978846, %v2117_v26 }
0x181a   :  { %3086 = vtanh.f32 %v2120_v63 }
0x181b   :  { %3088 = vtanh.f32 %v2119_v29 }
0x1824   :  { %v3087_v30 = vpop.eup %3086 }
0x1825   :  { %v3089_v31 = vpop.eup %3088  ;;  %v2124_v32 = vadd.f32 1.0, %v3087_v30 }
0x1826   :  { %v2123_v24 = vadd.f32 1.0, %v3089_v31 }
0x1827   :  { %v2126_v35 = vmul.f32 %v2124_v32, %v2110_v33 }
0x1828   :  { %v2125_v34 = vmul.f32 %v2123_v24, %v2109_v23 }
0x182a   :  { %2787 = vmatprep.mubr.msk.f32.mxu0 %vm1259_vm8, %v2125_v34 }
0x182b   :  { %2788 = vmatmul.mubr.msk.f32.vlgmr.msra.gmra.mrb[20].mxu0 %vm1259_vm8, %v2126_v35 }
0x18fe   :  { %v2789_v37 = vpop.f32.mrb[20].mxu0 }
0x18ff   :  { %v2218_v36 = vadd.f32 %v2789_v37, %v2139_v38  ;;  %v2212_v49 = vpop.f32.mrb[21].mxu0 }
0x1900   :  { %v2213_v40 = vadd.f32 %v2212_v49, %v2139_v38 }
0x1901   :  { %v2222_v41 = vadd.f32 %v2218_v36, %v2018_v0  ;;  %v2264_v0 = vld [vmem:[#allocation2 + $0xb0] sm:$0xff] }
0x1902   :  { %v2221_v42 = vadd.f32 %v2213_v40, %v2017_v62  ;;  %v2263_v62 = vld [vmem:[#allocation2 + $0xa8] sm:$0xff] }
0x1903   :  { %v2226_v48 = vsel %vm453_vm6, %v2222_v41, 0.0  ;;  %v2961_v1 = vpack.c.bf16 %v2264_v0, %v2263_v62 }
0x1904   :  { %2227 = vadd.xlane.f32.xlu1 %v2226_v48  ;;  %v2223_v43 = vsel %vm453_vm6, %v2221_v42, 0.0 }
0x1905   :  { %2224 = vadd.xlane.f32.xlu0 %v2223_v43  ;;  %2962 = vmatprep.subr.bf16.mxu1 %v2961_v1 }
0x1906   :  { %2964 = vmatpush3.bf16.msra.mxu1 %v2961_v1 }
0x1991   :  { %v2228_v12 = vpop.xlane.xlu1 %2227 }
0x1992   :  { %v2230_v44 = vmul.f32 0.03125, %v2228_v12  ;;  %v2225_v45 = vpop.xlane.xlu0 %2224 }
0x1993   :  { %v2229_v50 = vmul.f32 0.03125, %v2225_v45 }
0x1994   :  { %v2232_v51 = vsub.f32 %v2222_v41, %v2230_v44 }
0x1995   :  { %v2231_v52 = vsub.f32 %v2221_v42, %v2229_v50 }
0x1996   :  { %v2234_v53 = vmul.f32 %v2232_v51, %v2232_v51 }
0x1997   :  { %v2233_v46 = vmul.f32 %v2231_v52, %v2231_v52 }
0x1998   :  { %v2238_v47 = vsel %vm453_vm6, %v2234_v53, 0.0 }
0x1999   :  { %2239 = vadd.xlane.f32.xlu1 %v2238_v47  ;;  %v2235_v54 = vsel %vm453_vm6, %v2233_v46, 0.0 }
0x199a   :  { %2236 = vadd.xlane.f32.xlu0 %v2235_v54 }
0x1a26   :  { %v2240_v55 = vpop.xlane.xlu1 %2239 }
0x1a27   :  { %v2242_v2 = vmul.f32 0.03125, %v2240_v55  ;;  %v2237_v58 = vpop.xlane.xlu0 %2236 }
0x1a28   :  { %v2241_v5 = vmul.f32 0.03125, %v2237_v58 }
0x1a29   :  { %v2244_v59 = vadd.f32 1e-05, %v2242_v2 }
0x1a2a   :  { %v2243_v6 = vadd.f32 1e-05, %v2241_v5 }
0x1a2b   :  { %3090 = vrsqrt.f32 %v2244_v59 }
0x1a2c   :  { %3092 = vrsqrt.f32 %v2243_v6 }
0x1a35   :  { %v3091_v60 = vpop.eup %3090 }
0x1a36   :  { %v3093_v11 = vpop.eup %3092  ;;  %v2248_v13 = vmul.f32 %v3091_v60, %v2232_v51 }
0x1a37   :  { %v2247_v17 = vmul.f32 %v3093_v11, %v2231_v52 }
0x1a38   :  { %v2254_v14 = vmul.f32 %v2252_v8, %v2248_v13 }
0x1a39   :  { %v2253_v15 = vmul.f32 %v2252_v8, %v2247_v17 }
0x1a3a   :  { %v2260_v16 = vadd.f32 %v2258_v7, %v2254_v14 }
0x1a3b   :  { %v2259_v18 = vadd.f32 %v2258_v7, %v2253_v15 }
0x1a3d   :  { %2798 = vmatprep.mubr.msk.f32.mxu1 %vm453_vm6, %v2259_v18 }
0x1a3e   :  { %2799 = vmatmul.mubr.msk.f32.vlgmr.msra.gmra.mrb[14].mxu1 %vm453_vm6, %v2260_v16 }
0x1b11   :  { %v2800_v20 = vpop.f32.mrb[14].mxu1 }
0x1b12   :  { %v2348_v27 = vadd.f32 %v2800_v20, %v2458_v19  ;;  %v2342_v21 = vpop.f32.mrb[15].mxu1 }
0x1b13   :  { %v2343_v3 = vadd.f32 %v2458_v19, %v2342_v21 }
0x1b14   :  { %v2355_v22 = vsel %vm2351_vm5, %v2348_v27, -inf }
0x1b15   :  { %2356 = vmax.xlane.f32.xlu1 %v2355_v22  ;;  %v2352_v25 = vsel %vm2351_vm5, %v2343_v3, -inf }
0x1b16   :  { %2353 = vmax.xlane.f32.xlu0 %v2352_v25 }
0x1ba2   :  { %v2357_v9 = vpop.xlane.xlu1 %2356 }
0x1ba3   :  { %vm2359_vm9 = vcmp.eq.f32.partialorder %v2348_v27, %v2357_v9  ;;  %v2354_v28 = vpop.xlane.xlu0 %2353 }
0x1ba4   :  { %v2361_v39 = vsel %vm2359_vm9, %v3379_v10, 1073741824  ;;  %vm2358_vm10 = vcmp.eq.f32.partialorder %v2343_v3, %v2354_v28 }
0x1ba5   :  { %v2377_v4 = vsel %vm2351_vm5, %v2361_v39, 2147483647  ;;  %v2360_v26 = vsel %vm2358_vm10, %v3379_v10, 1073741824 }
0x1ba6   :  { %v2362_v63 = vsel %vm2351_vm5, %v2360_v26, 2147483647  ;;  %v2379_v29 = vshra.s32 %v2377_v4, 16  ;;  %v2378_v23 = vand.u32 65535, %v2377_v4 }
0x1ba7   :  { %v2364_v30 = vshra.s32 %v2362_v63, 16  ;;  %v2363_v24 = vand.u32 65535, %v2362_v63 }
0x1ba8   :  { %v2381_v31 = vcvt.s32.f32 %v2379_v29  ;;  %v2380_v34 = vcvt.s32.f32 %v2378_v23 }
0x1ba9   :  { %v2366_v32 = vcvt.s32.f32 %v2364_v30  ;;  %v2365_v38 = vcvt.s32.f32 %v2363_v24 }
0x1baa   :  { %2382 = vmin.xlane.f32.xlu1 %v2381_v31 }
0x1bab   :  { %2367 = vmin.xlane.f32.xlu0 %v2366_v32 }
0x1c37   :  { %v2383_v33 = vpop.xlane.xlu1 %2382 }
0x1c38   :  { %v2368_v35 = vpop.xlane.xlu0 %2367  ;;  %vm2384_vm11 = vcmp.eq.f32.partialorder %v2381_v31, %v2383_v33  ;;  %v2389_v10 = vcvt.f32.s32 %v2383_v33 }
0x1c39   :  { %v2385_v37 = vsel %vm2384_vm11, %v2380_v34, inf  ;;  %vm2369_vm12 = vcmp.eq.f32.partialorder %v2366_v32, %v2368_v35  ;;  %v2374_v49 = vcvt.f32.s32 %v2368_v35 }
0x1c3a   :  { %2386 = vmin.xlane.f32.xlu1 %v2385_v37  ;;  %v2370_v36 = vsel %vm2369_vm12, %v2365_v38, inf  ;;  %v2390_v41 = vshll.u32 %v2389_v10, 16 }
0x1c3b   :  { %2371 = vmin.xlane.f32.xlu0 %v2370_v36  ;;  %v2375_v43 = vshll.u32 %v2374_v49, 16 }
0x1cc7   :  { %v2387_v40 = vpop.xlane.xlu1 %2386 }
0x1cc8   :  { %v2388_v42 = vcvt.f32.s32 %v2387_v40  ;;  %v2372_v48 = vpop.xlane.xlu0 %2371 }
0x1cc9   :  { %v2373_v12 = vcvt.f32.s32 %v2372_v48 }
0x1cca   :  { %v2391_v44 = vadd.s32 %v2390_v41, %v2388_v42 }
0x1ccb   :  { %v2376_v45 = vadd.s32 %v2375_v43, %v2373_v12 }
0x1ccc   :  { %2394 = vst.msk [vmem:[%s3669_s8 + $0x8] sm:$0xff] %vm2392_vm13, %v2391_v44 }
0x1ccd   :  { %2393 = vst.msk [vmem:[%s3669_s8] sm:$0xff] %vm2392_vm13, %v2376_v45 }
0x1cce   :  { %2399 = vsyncpa [#allocation3], 1 }
0x1ccf   :  { %2400 = vsyncpa [#allocation5], 1 }
0x1cd0   :  { %2401 = vsyncpa [#allocation8], 1 }

</bundles_post_ra>
